<compile_context>
chip_gen: v5e
topology: v5e:2x2
jax: 0.10.0
libtpu: 0.0.40
codegen_flags: <defaults>
</compile_context>

<pallas_src>
import functools

import jax
import jax.numpy as jnp
from jax.experimental import pallas as pl
from jax.experimental.pallas import tpu as pltpu

# ----------------------------- configuration ------------------------------
B = 2            # batch
C_IN = 3         # image channels
IMG = 32         # image spatial size
PATCH = 16       # ViT patch size  -> 4 patches + CLS = 5 tokens
NP = (IMG // PATCH) * (IMG // PATCH)   # number of patches

V_HID = 128      # ViT hidden (stand-in for 768; multiple of 128 -> lane-dense)
V_LAYERS = 2
V_HEADS = 4
V_MLP = 256
V_EPS = 1e-12
FC_DIM = 256     # nn.Linear(hidden, 256) -- hard coded in the reference

G_VOCAB = 128    # GPT-2 vocab (stand-in for 50257; lane-dense)
G_EMBD = 128     # GPT-2 n_embd (stand-in for 768)
G_LAYERS = 2
G_HEADS = 4
G_MLP = 4 * G_EMBD
G_POS = 32
G_EPS = 1e-5
T_SEQ = 8        # caption length

VMEM = pltpu.MemorySpace.VMEM
BF16 = jnp.bfloat16
F32 = jnp.float32


def _vmem_spec():
    return pl.BlockSpec(memory_space=VMEM)


def _stacked_wspec(a):
    """BlockSpec for a [L, ...] stacked weight: block index follows the layer axis."""
    tail = (0,) * (a.ndim - 1)
    return pl.BlockSpec((1,) + a.shape[1:], lambda b, l: (l,) + tail)


def _layernorm(x, g, b, eps):
    mu = jnp.mean(x, axis=-1, keepdims=True)
    xc = x - mu
    var = jnp.mean(xc * xc, axis=-1, keepdims=True)
    return xc * jax.lax.rsqrt(var + eps) * g + b


def _gelu_tanh(x):
    # TODO(synk): HF ViT uses exact erf GELU; tanh approx == GPT-2 "gelu_new".
    c = jnp.float32(0.7978845608028654)  # sqrt(2/pi)
    return 0.5 * x * (1.0 + jnp.tanh(c * (x + 0.044715 * x * x * x)))


# ------------------------------ Pallas kernels -----------------------------
def _patch_embed_kernel(x_ref, w_ref, b_ref, o_ref):
    # x_ref: (B*NP, C*P*P) f32; w_ref: (C*P*P, D) bf16; b_ref: (1, D) f32.
    emb = jnp.dot(x_ref[...].astype(BF16), w_ref[...],
                  preferred_element_type=F32)
    o_ref[...] = (emb + b_ref[...]).astype(o_ref.dtype)


def _stack_block_kernel(x_ref, ln1g, ln1b, qkvw, qkvb, ow, ob,
                        ln2g, ln2b, w1, b1, w2, b2, o_ref, acc_ref,
                        *, heads, eps, causal):
    """Fused pre-LN transformer block.

    grid = (B, L): batch is "parallel", layer is "arbitrary".  The activation
    lives in the f32 VMEM scratch `acc_ref` across the layer sweep; the HBM
    output is written only on the last layer.
    """
    l = pl.program_id(1)

    @pl.when(l == 0)
    def _():
        acc_ref[...] = x_ref[0].astype(F32)

    x = acc_ref[...]                                   # [T, D] f32
    t, d = x.shape
    dh = d // heads
    scale = 1.0 / (dh ** 0.5)

    # ---- LN1 + fused QKV projection (bf16 weights, f32 accumulate) ----
    n1 = _layernorm(x, ln1g[0], ln1b[0], eps)
    qkv = jnp.dot(n1.astype(BF16), qkvw[0], preferred_element_type=F32) + qkvb[0]

    if causal:
        qi = jax.lax.broadcasted_iota(jnp.int32, (t, t), 0)
        ki = jax.lax.broadcasted_iota(jnp.int32, (t, t), 1)
        keep = ki <= qi

    # ---- per-head attention (bf16 MXU dots, f32 softmax) ----
    # TODO(synk): at real head counts use a batched formulation / fori_loop
    # instead of this small static unroll (4 heads at stand-in dims).
    ctx_heads = []
    for h in range(heads):
        q = (qkv[:, h * dh:(h + 1) * dh] * scale).astype(BF16)       # scale in q
        k = qkv[:, d + h * dh:d + (h + 1) * dh].astype(BF16)
        v = qkv[:, 2 * d + h * dh:2 * d + (h + 1) * dh].astype(BF16)
        s = jax.lax.dot_general(q, k, (((1,), (1,)), ((), ())),
                                preferred_element_type=F32)           # [T, T] f32
        if causal:
            s = jnp.where(keep, s, jnp.float32(-1e30))
        m = jnp.max(s, axis=-1, keepdims=True)
        p = jnp.exp(s - m)
        r = pl.reciprocal(jnp.sum(p, axis=-1, keepdims=True), approx=True)  # EUP
        p = p * r
        ctx_heads.append(jnp.dot(p.astype(BF16), v, preferred_element_type=F32))

    # Single full-depth out-projection instead of per-head accumulation.
    ctx = jnp.concatenate(ctx_heads, axis=-1)                         # [T, D]
    proj = jnp.dot(ctx.astype(BF16), ow[0], preferred_element_type=F32)

    # ---- residual 1 (bias fused) ----
    x1 = x + proj + ob[0]

    # ---- LN2 + MLP (GELU tanh approx) + residual 2 ----
    n2 = _layernorm(x1, ln2g[0], ln2b[0], eps)
    hdn = jnp.dot(n2.astype(BF16), w1[0], preferred_element_type=F32) + b1[0]
    hdn = _gelu_tanh(hdn)
    out = x1 + jnp.dot(hdn.astype(BF16), w2[0], preferred_element_type=F32) + b2[0]

    acc_ref[...] = out

    @pl.when(l == pl.num_programs(1) - 1)
    def _():
        o_ref[0] = out.astype(o_ref.dtype)


def _vit_head_kernel(cls_ref, g_ref, b_ref, fcw_ref, fcb_ref, pw_ref, pb_ref,
                     o_ref, *, eps):
    # Fused: ViT final LN (row-wise, CLS rows only) -> fc(256) -> proj(n_embd).
    n = _layernorm(cls_ref[...].astype(F32), g_ref[...], b_ref[...], eps)
    f = jnp.dot(n.astype(BF16), fcw_ref[...], preferred_element_type=F32) + fcb_ref[...]
    o = jnp.dot(f.astype(BF16), pw_ref[...], preferred_element_type=F32) + pb_ref[...]
    o_ref[...] = o.astype(o_ref.dtype)


def _lm_head_kernel(x_ref, g_ref, b_ref, wt_ref, o_ref, *, eps):
    # Fused: GPT-2 final LN + tied, bias-free LM head (bf16 pre-transposed weight).
    n = _layernorm(x_ref[...].astype(F32), g_ref[...], b_ref[...], eps)
    o_ref[...] = jnp.dot(n.astype(BF16), wt_ref[...],
                         preferred_element_type=F32).astype(o_ref.dtype)


# ------------------------------ kernel wrappers -----------------------------
def patch_embed(x2d, w, bias):
    # Single un-gridded call: [B*NP, C*P*P] @ [C*P*P, D] + bias.
    rows = x2d.shape[0]
    d = w.shape[1]
    return pl.pallas_call(
        _patch_embed_kernel,
        out_shape=jax.ShapeDtypeStruct((rows, d), F32),
        in_specs=[_vmem_spec()] * 3,
        out_specs=_vmem_spec(),
    )(x2d, w, bias)


def fused_stack(h, sp, *, heads, causal, eps):
    """Run the whole L-layer transformer stack in ONE pallas_call."""
    b, t, d = h.shape
    names = ['ln1_g', 'ln1_b', 'qkv_w', 'qkv_b', 'o_w', 'o_b',
             'ln2_g', 'ln2_b', 'fc1_w', 'fc1_b', 'fc2_w', 'fc2_b']
    ws = [sp[n] for n in names]
    num_layers = ws[2].shape[0]

    act_spec = pl.BlockSpec((1, t, d), lambda bi, li: (bi, 0, 0))
    kernel = functools.partial(_stack_block_kernel, heads=heads, eps=eps,
                               causal=causal)
    # TODO(synk): at real GPT-2 dims set vmem_limit_bytes explicitly (v7x has
    # 64 MiB physical VMEM; v5e default scoped limit is 16 MiB).
    return pl.pallas_call(
        kernel,
        out_shape=jax.ShapeDtypeStruct((b, t, d), F32),
        grid=(b, num_layers),
        in_specs=[act_spec] + [_stacked_wspec(a) for a in ws],
        out_specs=act_spec,
        scratch_shapes=[pltpu.VMEM((t, d), F32)],
        compiler_params=pltpu.CompilerParams(
            dimension_semantics=("parallel", "arbitrary")),
    )(h, *ws)


def vit_head(cls_tok, params):
    bsz = cls_tok.shape[0]
    return pl.pallas_call(
        functools.partial(_vit_head_kernel, eps=V_EPS),
        out_shape=jax.ShapeDtypeStruct((bsz, G_EMBD), F32),
        in_specs=[_vmem_spec()] * 7,
        out_specs=_vmem_spec(),
    )(cls_tok, params['v_lnf_g'], params['v_lnf_b'],
      params['fc_w'], params['fc_b'], params['proj_w'], params['proj_b'])


def lm_head(h, g, b, wte_t):
    bsz, t, d = h.shape
    v = wte_t.shape[1]
    flat = h.reshape(bsz * t, d)      # LN is row-wise -> flatten (B,T) is exact
    # TODO(synk): at vocab=50257, grid over vocab tiles (multiple of 128) with
    # a double/triple-buffered bf16 weight BlockSpec instead of one shot.
    out = pl.pallas_call(
        functools.partial(_lm_head_kernel, eps=G_EPS),
        out_shape=jax.ShapeDtypeStruct((bsz * t, v), F32),
        in_specs=[_vmem_spec()] * 4,
        out_specs=_vmem_spec(),
    )(flat, g, b, wte_t)
    return out.reshape(bsz, t, v)


# --------------------------- model building blocks -------------------------
def vit_encode_project(params, image):
    """FineTunedViT forward + the CPTR projection: image -> [B, n_embd]."""
    b = image.shape[0]
    p = PATCH
    # Patch extraction (== Conv2d(kernel=stride=patch)) -> [B*Np, C*P*P]  (glue)
    x = image.reshape(b, C_IN, IMG // p, p, IMG // p, p)
    x = x.transpose(0, 2, 4, 1, 3, 5).reshape(b * NP, C_IN * p * p)

    emb = patch_embed(x, params['patch_w'], params['patch_b'])
    emb = emb.reshape(b, NP, V_HID)
    cls = jnp.broadcast_to(params['cls'][None], (b, 1, V_HID))
    h = jnp.concatenate([cls, emb], axis=1) + params['vpos'][None]   # [B, Np+1, D]

    h = fused_stack(h, params['vit_stack'], heads=V_HEADS, causal=False, eps=V_EPS)

    # last_hidden_state[:, 0, :] -- LN is row-wise, so LN only the CLS rows.
    cls_tok = h[:, 0, :]
    return vit_head(cls_tok, params)                                 # [B, n_embd]


def gpt2_decoder(params, input_ids, encoder_hidden_states):
    # encoder_hidden_states is ignored (add_cross_attention=False in 'gpt2').
    del encoder_hidden_states
    b, t = input_ids.shape
    h = jnp.take(params['wte'], input_ids, axis=0) + params['wpe'][None, :t, :]
    h = fused_stack(h, params['gpt_stack'], heads=G_HEADS, causal=True, eps=G_EPS)
    return lm_head(h, params['g_lnf_g'], params['g_lnf_b'], params['wte_t'])


def cptr_forward(params, image, input_ids):
    vit_features = vit_encode_project(params, image)[:, None, :]     # unsqueeze(1)
    return gpt2_decoder(params, input_ids, vit_features)             # [B, T, vocab]


# ------------------------------ parameter init -----------------------------
def init_params(key):
    keys = iter(jax.random.split(key, 64))

    def nrm(shape, scale=0.02, dtype=F32):
        return (scale * jax.random.normal(next(keys), shape, dtype=F32)).astype(dtype)

    def ones(shape):
        return jnp.ones(shape, F32)

    def zeros(shape):
        return jnp.zeros(shape, F32)

    def stack_params(num_layers, d, d_mlp):
        # Matmul weights stored bf16 (cast ONCE); LN params / biases stay f32.
        return {
            'ln1_g': ones((num_layers, 1, d)), 'ln1_b': zeros((num_layers, 1, d)),
            'qkv_w': nrm((num_layers, d, 3 * d), dtype=BF16),
            'qkv_b': zeros((num_layers, 1, 3 * d)),
            'o_w': nrm((num_layers, d, d), dtype=BF16),
            'o_b': zeros((num_layers, 1, d)),
            'ln2_g': ones((num_layers, 1, d)), 'ln2_b': zeros((num_layers, 1, d)),
            'fc1_w': nrm((num_layers, d, d_mlp), dtype=BF16),
            'fc1_b': zeros((num_layers, 1, d_mlp)),
            'fc2_w': nrm((num_layers, d_mlp, d), dtype=BF16),
            'fc2_b': zeros((num_layers, 1, d)),
        }

    wte = nrm((G_VOCAB, G_EMBD))                  # f32 for the embedding gather
    params = {
        # ViT (patch_w pre-flattened/transposed once: [C*P*P, D], bf16)
        'patch_w': nrm((C_IN * PATCH * PATCH, V_HID), dtype=BF16),
        'patch_b': zeros((1, V_HID)),
        'cls': nrm((1, V_HID)),
        'vpos': nrm((NP + 1, V_HID)),
        'vit_stack': stack_params(V_LAYERS, V_HID, V_MLP),
        'v_lnf_g': ones((1, V_HID)),
        'v_lnf_b': zeros((1, V_HID)),
        'fc_w': nrm((V_HID, FC_DIM), dtype=BF16),
        'fc_b': zeros((1, FC_DIM)),
        'proj_w': nrm((FC_DIM, G_EMBD), dtype=BF16),
        'proj_b': zeros((1, G_EMBD)),
        # GPT-2 (tied LM head: wte_t is the pre-transposed bf16 copy, made once)
        'wte': wte,
        'wte_t': wte.T.astype(BF16),
        'wpe': nrm((G_POS, G_EMBD)),
        'gpt_stack': stack_params(G_LAYERS, G_EMBD, G_MLP),
        'g_lnf_g': ones((1, G_EMBD)),
        'g_lnf_b': zeros((1, G_EMBD)),
    }
    return params


# ---------------------------------- main -----------------------------------
if __name__ == "__main__":
    key = jax.random.PRNGKey(0)
    kp, ki, kt = jax.random.split(key, 3)

    params = init_params(kp)
    image = jax.random.normal(ki, (B, C_IN, IMG, IMG), dtype=F32)
    input_ids = jax.random.randint(kt, (B, T_SEQ), 0, G_VOCAB, dtype=jnp.int32)

    fwd = jax.jit(cptr_forward)
    logits = jax.block_until_ready(fwd(params, image, input_ids))

    # The GPT-2 decoder ignores encoder_hidden_states (add_cross_attention=False
    # in 'gpt2'), so XLA dead-code-eliminates the encoder inside cptr_forward.
    # Run it explicitly so the ViT Pallas kernels are exercised on device too.
    feats = jax.block_until_ready(jax.jit(vit_encode_project)(params, image))

    assert logits.shape == (B, T_SEQ, G_VOCAB), logits.shape
    assert feats.shape == (B, G_EMBD), feats.shape
    assert bool(jnp.all(jnp.isfinite(logits)))
    assert bool(jnp.all(jnp.isfinite(feats)))
    print("KERNEL_OK")
</pallas_src>

<mosaic_0001>
module attributes {stable_mosaic.version = 11 : i64} {
  func.func @_lm_head_kernel(%arg0: memref<16x128xf32, #tpu.memory_space<vmem>>, %arg1: memref<1x128xf32, #tpu.memory_space<vmem>>, %arg2: memref<1x128xf32, #tpu.memory_space<vmem>>, %arg3: memref<128x128xbf16, #tpu.memory_space<vmem>>, %arg4: memref<16x128xf32, #tpu.memory_space<vmem>>) attributes {dimension_semantics = [], scalar_prefetch = 0 : i64, scratch_operands = 0 : i64, tpu.core_type = #tpu.core_type<tc>} {
    %c0 = arith.constant 0 : index
    %c0_0 = arith.constant 0 : index
    %0 = vector.load %arg0[%c0, %c0_0] : memref<16x128xf32, #tpu.memory_space<vmem>>, vector<16x128xf32>
    %c0_1 = arith.constant 0 : index
    %c0_2 = arith.constant 0 : index
    %1 = vector.load %arg1[%c0_1, %c0_2] : memref<1x128xf32, #tpu.memory_space<vmem>>, vector<1x128xf32>
    %c0_3 = arith.constant 0 : index
    %c0_4 = arith.constant 0 : index
    %2 = vector.load %arg2[%c0_3, %c0_4] : memref<1x128xf32, #tpu.memory_space<vmem>>, vector<1x128xf32>
    %cst = arith.constant dense<0.000000e+00> : vector<16xf32>
    %3 = vector.multi_reduction <add>, %0, %cst [1] : vector<16x128xf32> to vector<16xf32>
    %4 = vector.shape_cast %3 : vector<16xf32> to vector<16x1xf32>
    %cst_5 = arith.constant 1.280000e+02 : f32
    %5 = vector.broadcast %cst_5 : f32 to vector<16x1xf32>
    %6 = arith.divf %4, %5 : vector<16x1xf32>
    %7 = vector.broadcast %6 : vector<16x1xf32> to vector<16x128xf32>
    %8 = arith.subf %0, %7 : vector<16x128xf32>
    %9 = arith.mulf %8, %8 : vector<16x128xf32>
    %cst_6 = arith.constant dense<0.000000e+00> : vector<16xf32>
    %10 = vector.multi_reduction <add>, %9, %cst_6 [1] : vector<16x128xf32> to vector<16xf32>
    %11 = vector.shape_cast %10 : vector<16xf32> to vector<16x1xf32>
    %cst_7 = arith.constant 1.280000e+02 : f32
    %12 = vector.broadcast %cst_7 : f32 to vector<16x1xf32>
    %13 = arith.divf %11, %12 : vector<16x1xf32>
    %cst_8 = arith.constant 9.99999974E-6 : f32
    %14 = vector.broadcast %cst_8 : f32 to vector<16x1xf32>
    %15 = arith.addf %13, %14 : vector<16x1xf32>
    %16 = math.rsqrt %15 : vector<16x1xf32>
    %17 = vector.broadcast %16 : vector<16x1xf32> to vector<16x128xf32>
    %18 = arith.mulf %8, %17 : vector<16x128xf32>
    %19 = vector.broadcast %1 : vector<1x128xf32> to vector<16x128xf32>
    %20 = arith.mulf %18, %19 : vector<16x128xf32>
    %21 = vector.broadcast %2 : vector<1x128xf32> to vector<16x128xf32>
    %22 = arith.addf %20, %21 : vector<16x128xf32>
    %23 = arith.truncf %22 : vector<16x128xf32> to vector<16x128xbf16>
    %c0_9 = arith.constant 0 : index
    %c0_10 = arith.constant 0 : index
    %24 = vector.load %arg3[%c0_9, %c0_10] : memref<128x128xbf16, #tpu.memory_space<vmem>>, vector<128x128xbf16>
    %cst_11 = arith.constant dense<0.000000e+00> : vector<16x128xf32>
    %25 = tpu.matmul %23, %24, %cst_11 {dimension_numbers = #tpu.dot_dimension_numbers<[1], [0], [0], [1], [0, 0, 1, 1], [], []>} : vector<16x128xbf16>, vector<128x128xbf16>, vector<16x128xf32> -> vector<16x128xf32>
    %c0_12 = arith.constant 0 : index
    %c0_13 = arith.constant 0 : index
    %26 = vector.load %arg4[%c0_12, %c0_13] : memref<16x128xf32, #tpu.memory_space<vmem>>, vector<16x128xf32>
    tpu.vector_store %arg4[%c0_12, %c0_13], %25 {strides = array<i32>} : memref<16x128xf32, #tpu.memory_space<vmem>>, vector<16x128xf32>,
    return
  }
}

module attributes {stable_mosaic.version = 11 : i64} {
  func.func @_stack_block_kernel(%arg0: i32, %arg1: i32, %arg2: memref<1x8x128xf32, #tpu.memory_space<vmem>>, %arg3: memref<1x1x128xf32, #tpu.memory_space<vmem>>, %arg4: memref<1x1x128xf32, #tpu.memory_space<vmem>>, %arg5: memref<1x128x384xbf16, #tpu.memory_space<vmem>>, %arg6: memref<1x1x384xf32, #tpu.memory_space<vmem>>, %arg7: memref<1x128x128xbf16, #tpu.memory_space<vmem>>, %arg8: memref<1x1x128xf32, #tpu.memory_space<vmem>>, %arg9: memref<1x1x128xf32, #tpu.memory_space<vmem>>, %arg10: memref<1x1x128xf32, #tpu.memory_space<vmem>>, %arg11: memref<1x128x512xbf16, #tpu.memory_space<vmem>>, %arg12: memref<1x1x512xf32, #tpu.memory_space<vmem>>, %arg13: memref<1x512x128xbf16, #tpu.memory_space<vmem>>, %arg14: memref<1x1x128xf32, #tpu.memory_space<vmem>>, %arg15: memref<1x8x128xf32, #tpu.memory_space<vmem>>, %arg16: memref<8x128xf32, #tpu.memory_space<vmem>>) attributes {dimension_semantics = [#tpu.dimension_semantics<parallel>, #tpu.dimension_semantics<arbitrary>], iteration_bounds = array<i64: 2, 2>, scalar_prefetch = 0 : i64, scratch_operands = 1 : i64, tpu.core_type = #tpu.core_type<tc>, window_params = [{transform_indices = @transform_0, window_bounds = array<i64: 1, 8, 128>}, {transform_indices = @transform_1, window_bounds = array<i64: 1, 1, 128>}, {transform_indices = @transform_2, window_bounds = array<i64: 1, 1, 128>}, {transform_indices = @transform_3, window_bounds = array<i64: 1, 128, 384>}, {transform_indices = @transform_4, window_bounds = array<i64: 1, 1, 384>}, {transform_indices = @transform_5, window_bounds = array<i64: 1, 128, 128>}, {transform_indices = @transform_6, window_bounds = array<i64: 1, 1, 128>}, {transform_indices = @transform_7, window_bounds = array<i64: 1, 1, 128>}, {transform_indices = @transform_8, window_bounds = array<i64: 1, 1, 128>}, {transform_indices = @transform_9, window_bounds = array<i64: 1, 128, 512>}, {transform_indices = @transform_10, window_bounds = array<i64: 1, 1, 512>}, {transform_indices = @transform_11, window_bounds = array<i64: 1, 512, 128>}, {transform_indices = @transform_12, window_bounds = array<i64: 1, 1, 128>}, {transform_indices = @transform_13, window_bounds = array<i64: 1, 8, 128>}]} {
    %c0_i32 = arith.constant 0 : i32
    %0 = arith.cmpi eq, %arg1, %c0_i32 : i32
    %1 = arith.extui %0 : i1 to i32
    %c0_i32_0 = arith.constant 0 : i32
    %2 = arith.cmpi ne, %1, %c0_i32_0 : i32
    scf.if %2 {
      %c0_82 = arith.constant 0 : index
      %c0_83 = arith.constant 0 : index
      %c0_84 = arith.constant 0 : index
      %199 = vector.load %arg2[%c0_82, %c0_83, %c0_84] : memref<1x8x128xf32, #tpu.memory_space<vmem>>, vector<1x8x128xf32>
      %200 = vector.shape_cast %199 : vector<1x8x128xf32> to vector<8x128xf32>
      %c0_85 = arith.constant 0 : index
      %c0_86 = arith.constant 0 : index
      %201 = vector.load %arg16[%c0_85, %c0_86] : memref<8x128xf32, #tpu.memory_space<vmem>>, vector<8x128xf32>
      tpu.vector_store %arg16[%c0_85, %c0_86], %200 {strides = array<i32>} : memref<8x128xf32, #tpu.memory_space<vmem>>, vector<8x128xf32>,
    } else {
    }
    %c0 = arith.constant 0 : index
    %c0_1 = arith.constant 0 : index
    %3 = vector.load %arg16[%c0, %c0_1] : memref<8x128xf32, #tpu.memory_space<vmem>>, vector<8x128xf32>
    %c0_2 = arith.constant 0 : index
    %c0_3 = arith.constant 0 : index
    %c0_4 = arith.constant 0 : index
    %4 = vector.load %arg3[%c0_2, %c0_3, %c0_4] : memref<1x1x128xf32, #tpu.memory_space<vmem>>, vector<1x1x128xf32>
    %5 = vector.shape_cast %4 : vector<1x1x128xf32> to vector<1x128xf32>
    %c0_5 = arith.constant 0 : index
    %c0_6 = arith.constant 0 : index
    %c0_7 = arith.constant 0 : index
    %6 = vector.load %arg4[%c0_5, %c0_6, %c0_7] : memref<1x1x128xf32, #tpu.memory_space<vmem>>, vector<1x1x128xf32>
    %7 = vector.shape_cast %6 : vector<1x1x128xf32> to vector<1x128xf32>
    %cst = arith.constant dense<0.000000e+00> : vector<8xf32>
    %8 = vector.multi_reduction <add>, %3, %cst [1] : vector<8x128xf32> to vector<8xf32>
    %9 = vector.shape_cast %8 : vector<8xf32> to vector<8x1xf32>
    %cst_8 = arith.constant 1.280000e+02 : f32
    %10 = vector.broadcast %cst_8 : f32 to vector<8x1xf32>
    %11 = arith.divf %9, %10 : vector<8x1xf32>
    %12 = vector.broadcast %11 : vector<8x1xf32> to vector<8x128xf32>
    %13 = arith.subf %3, %12 : vector<8x128xf32>
    %14 = arith.mulf %13, %13 : vector<8x128xf32>
    %cst_9 = arith.constant dense<0.000000e+00> : vector<8xf32>
    %15 = vector.multi_reduction <add>, %14, %cst_9 [1] : vector<8x128xf32> to vector<8xf32>
    %16 = vector.shape_cast %15 : vector<8xf32> to vector<8x1xf32>
    %cst_10 = arith.constant 1.280000e+02 : f32
    %17 = vector.broadcast %cst_10 : f32 to vector<8x1xf32>
    %18 = arith.divf %16, %17 : vector<8x1xf32>
    %cst_11 = arith.constant 9.99999974E-6 : f32
    %19 = vector.broadcast %cst_11 : f32 to vector<8x1xf32>
    %20 = arith.addf %18, %19 : vector<8x1xf32>
    %21 = math.rsqrt %20 : vector<8x1xf32>
    %22 = vector.broadcast %21 : vector<8x1xf32> to vector<8x128xf32>
    %23 = arith.mulf %13, %22 : vector<8x128xf32>
    %24 = vector.broadcast %5 : vector<1x128xf32> to vector<8x128xf32>
    %25 = arith.mulf %23, %24 : vector<8x128xf32>
    %26 = vector.broadcast %7 : vector<1x128xf32> to vector<8x128xf32>
    %27 = arith.addf %25, %26 : vector<8x128xf32>
    %28 = arith.truncf %27 : vector<8x128xf32> to vector<8x128xbf16>
    %c0_12 = arith.constant 0 : index
    %c0_13 = arith.constant 0 : index
    %c0_14 = arith.constant 0 : index
    %29 = vector.load %arg5[%c0_12, %c0_13, %c0_14] : memref<1x128x384xbf16, #tpu.memory_space<vmem>>, vector<1x128x384xbf16>
    %30 = vector.shape_cast %29 : vector<1x128x384xbf16> to vector<128x384xbf16>
    %cst_15 = arith.constant dense<0.000000e+00> : vector<8x384xf32>
    %31 = tpu.matmul %28, %30, %cst_15 {dimension_numbers = #tpu.dot_dimension_numbers<[1], [0], [0], [1], [0, 0, 1, 1], [], []>} : vector<8x128xbf16>, vector<128x384xbf16>, vector<8x384xf32> -> vector<8x384xf32>
    %c0_16 = arith.constant 0 : index
    %c0_17 = arith.constant 0 : index
    %c0_18 = arith.constant 0 : index
    %32 = vector.load %arg6[%c0_16, %c0_17, %c0_18] : memref<1x1x384xf32, #tpu.memory_space<vmem>>, vector<1x1x384xf32>
    %33 = vector.shape_cast %32 : vector<1x1x384xf32> to vector<1x384xf32>
    %34 = vector.broadcast %33 : vector<1x384xf32> to vector<8x384xf32>
    %35 = arith.addf %31, %34 : vector<8x384xf32>
    %36 = tpu.iota {dimensions = array<i32: 0>} : vector<8x8xi32>
    %37 = tpu.iota {dimensions = array<i32: 1>} : vector<8x8xi32>
    %38 = arith.cmpi sle, %37, %36 : vector<8x8xi32>
    %39 = vector.extract_strided_slice %35 {offsets = [0, 0], sizes = [8, 32], strides = [1, 1]} : vector<8x384xf32> to vector<8x32xf32>
    %cst_19 = arith.constant 0.176776692 : f32
    %40 = vector.broadcast %cst_19 : f32 to vector<8x32xf32>
    %41 = arith.mulf %39, %40 : vector<8x32xf32>
    %42 = arith.truncf %41 : vector<8x32xf32> to vector<8x32xbf16>
    %43 = vector.extract_strided_slice %35 {offsets = [0, 128], sizes = [8, 32], strides = [1, 1]} : vector<8x384xf32> to vector<8x32xf32>
    %44 = arith.truncf %43 : vector<8x32xf32> to vector<8x32xbf16>
    %45 = vector.extract_strided_slice %35 {offsets = [0, 256], sizes = [8, 32], strides = [1, 1]} : vector<8x384xf32> to vector<8x32xf32>
    %46 = arith.truncf %45 : vector<8x32xf32> to vector<8x32xbf16>
    %cst_20 = arith.constant dense<0.000000e+00> : vector<8x8xf32>
    %47 = tpu.matmul %42, %44, %cst_20 {dimension_numbers = #tpu.dot_dimension_numbers<[1], [1], [0], [0], [0, 0, 1, 0], [], []>} : vector<8x32xbf16>, vector<8x32xbf16>, vector<8x8xf32> -> vector<8x8xf32>
    %cst_21 = arith.constant -1.000000e+30 : f32
    %48 = vector.broadcast %cst_21 : f32 to vector<8x8xf32>
    %49 = arith.select %38, %47, %48 : vector<8x8xi1>, vector<8x8xf32>
    %cst_22 = arith.constant dense<0xFF800000> : vector<8xf32>
    %50 = vector.multi_reduction <maximumf>, %49, %cst_22 [1] : vector<8x8xf32> to vector<8xf32>
    %51 = vector.shape_cast %50 : vector<8xf32> to vector<8x1xf32>
    %52 = vector.broadcast %51 : vector<8x1xf32> to vector<8x8xf32>
    %53 = arith.subf %49, %52 : vector<8x8xf32>
    %54 = math.exp %53 : vector<8x8xf32>
    %cst_23 = arith.constant dense<0.000000e+00> : vector<8xf32>
    %55 = vector.multi_reduction <add>, %54, %cst_23 [1] : vector<8x8xf32> to vector<8xf32>
    %56 = vector.shape_cast %55 : vector<8xf32> to vector<8x1xf32>
    %57 = tpu.reciprocal %56 {approx = true} : vector<8x1xf32> -> vector<8x1xf32>
    %58 = vector.broadcast %57 : vector<8x1xf32> to vector<8x8xf32>
    %59 = arith.mulf %54, %58 : vector<8x8xf32>
    %60 = arith.truncf %59 : vector<8x8xf32> to vector<8x8xbf16>
    %cst_24 = arith.constant dense<0.000000e+00> : vector<8x32xf32>
    %61 = tpu.matmul %60, %46, %cst_24 {dimension_numbers = #tpu.dot_dimension_numbers<[1], [0], [0], [1], [0, 0, 1, 1], [], []>} : vector<8x8xbf16>, vector<8x32xbf16>, vector<8x32xf32> -> vector<8x32xf32>
    %62 = vector.extract_strided_slice %35 {offsets = [0, 32], sizes = [8, 32], strides = [1, 1]} : vector<8x384xf32> to vector<8x32xf32>
    %cst_25 = arith.constant 0.176776692 : f32
    %63 = vector.broadcast %cst_25 : f32 to vector<8x32xf32>
    %64 = arith.mulf %62, %63 : vector<8x32xf32>
    %65 = arith.truncf %64 : vector<8x32xf32> to vector<8x32xbf16>
    %66 = vector.extract_strided_slice %35 {offsets = [0, 160], sizes = [8, 32], strides = [1, 1]} : vector<8x384xf32> to vector<8x32xf32>
    %67 = arith.truncf %66 : vector<8x32xf32> to vector<8x32xbf16>
    %68 = vector.extract_strided_slice %35 {offsets = [0, 288], sizes = [8, 32], strides = [1, 1]} : vector<8x384xf32> to vector<8x32xf32>
    %69 = arith.truncf %68 : vector<8x32xf32> to vector<8x32xbf16>
    %cst_26 = arith.constant dense<0.000000e+00> : vector<8x8xf32>
    %70 = tpu.matmul %65, %67, %cst_26 {dimension_numbers = #tpu.dot_dimension_numbers<[1], [1], [0], [0], [0, 0, 1, 0], [], []>} : vector<8x32xbf16>, vector<8x32xbf16>, vector<8x8xf32> -> vector<8x8xf32>
    %cst_27 = arith.constant -1.000000e+30 : f32
    %71 = vector.broadcast %cst_27 : f32 to vector<8x8xf32>
    %72 = arith.select %38, %70, %71 : vector<8x8xi1>, vector<8x8xf32>
    %cst_28 = arith.constant dense<0xFF800000> : vector<8xf32>
    %73 = vector.multi_reduction <maximumf>, %72, %cst_28 [1] : vector<8x8xf32> to vector<8xf32>
    %74 = vector.shape_cast %73 : vector<8xf32> to vector<8x1xf32>
    %75 = vector.broadcast %74 : vector<8x1xf32> to vector<8x8xf32>
    %76 = arith.subf %72, %75 : vector<8x8xf32>
    %77 = math.exp %76 : vector<8x8xf32>
    %cst_29 = arith.constant dense<0.000000e+00> : vector<8xf32>
    %78 = vector.multi_reduction <add>, %77, %cst_29 [1] : vector<8x8xf32> to vector<8xf32>
    %79 = vector.shape_cast %78 : vector<8xf32> to vector<8x1xf32>
    %80 = tpu.reciprocal %79 {approx = true} : vector<8x1xf32> -> vector<8x1xf32>
    %81 = vector.broadcast %80 : vector<8x1xf32> to vector<8x8xf32>
    %82 = arith.mulf %77, %81 : vector<8x8xf32>
    %83 = arith.truncf %82 : vector<8x8xf32> to vector<8x8xbf16>
    %cst_30 = arith.constant dense<0.000000e+00> : vector<8x32xf32>
    %84 = tpu.matmul %83, %69, %cst_30 {dimension_numbers = #tpu.dot_dimension_numbers<[1], [0], [0], [1], [0, 0, 1, 1], [], []>} : vector<8x8xbf16>, vector<8x32xbf16>, vector<8x32xf32> -> vector<8x32xf32>
    %85 = vector.extract_strided_slice %35 {offsets = [0, 64], sizes = [8, 32], strides = [1, 1]} : vector<8x384xf32> to vector<8x32xf32>
    %cst_31 = arith.constant 0.176776692 : f32
    %86 = vector.broadcast %cst_31 : f32 to vector<8x32xf32>
    %87 = arith.mulf %85, %86 : vector<8x32xf32>
    %88 = arith.truncf %87 : vector<8x32xf32> to vector<8x32xbf16>
    %89 = vector.extract_strided_slice %35 {offsets = [0, 192], sizes = [8, 32], strides = [1, 1]} : vector<8x384xf32> to vector<8x32xf32>
    %90 = arith.truncf %89 : vector<8x32xf32> to vector<8x32xbf16>
    %91 = vector.extract_strided_slice %35 {offsets = [0, 320], sizes = [8, 32], strides = [1, 1]} : vector<8x384xf32> to vector<8x32xf32>
    %92 = arith.truncf %91 : vector<8x32xf32> to vector<8x32xbf16>
    %cst_32 = arith.constant dense<0.000000e+00> : vector<8x8xf32>
    %93 = tpu.matmul %88, %90, %cst_32 {dimension_numbers = #tpu.dot_dimension_numbers<[1], [1], [0], [0], [0, 0, 1, 0], [], []>} : vector<8x32xbf16>, vector<8x32xbf16>, vector<8x8xf32> -> vector<8x8xf32>
    %cst_33 = arith.constant -1.000000e+30 : f32
    %94 = vector.broadcast %cst_33 : f32 to vector<8x8xf32>
    %95 = arith.select %38, %93, %94 : vector<8x8xi1>, vector<8x8xf32>
    %cst_34 = arith.constant dense<0xFF800000> : vector<8xf32>
    %96 = vector.multi_reduction <maximumf>, %95, %cst_34 [1] : vector<8x8xf32> to vector<8xf32>
    %97 = vector.shape_cast %96 : vector<8xf32> to vector<8x1xf32>
    %98 = vector.broadcast %97 : vector<8x1xf32> to vector<8x8xf32>
    %99 = arith.subf %95, %98 : vector<8x8xf32>
    %100 = math.exp %99 : vector<8x8xf32>
    %cst_35 = arith.constant dense<0.000000e+00> : vector<8xf32>
    %101 = vector.multi_reduction <add>, %100, %cst_35 [1] : vector<8x8xf32> to vector<8xf32>
    %102 = vector.shape_cast %101 : vector<8xf32> to vector<8x1xf32>
    %103 = tpu.reciprocal %102 {approx = true} : vector<8x1xf32> -> vector<8x1xf32>
    %104 = vector.broadcast %103 : vector<8x1xf32> to vector<8x8xf32>
    %105 = arith.mulf %100, %104 : vector<8x8xf32>
    %106 = arith.truncf %105 : vector<8x8xf32> to vector<8x8xbf16>
    %cst_36 = arith.constant dense<0.000000e+00> : vector<8x32xf32>
    %107 = tpu.matmul %106, %92, %cst_36 {dimension_numbers = #tpu.dot_dimension_numbers<[1], [0], [0], [1], [0, 0, 1, 1], [], []>} : vector<8x8xbf16>, vector<8x32xbf16>, vector<8x32xf32> -> vector<8x32xf32>
    %108 = vector.extract_strided_slice %35 {offsets = [0, 96], sizes = [8, 32], strides = [1, 1]} : vector<8x384xf32> to vector<8x32xf32>
    %cst_37 = arith.constant 0.176776692 : f32
    %109 = vector.broadcast %cst_37 : f32 to vector<8x32xf32>
    %110 = arith.mulf %108, %109 : vector<8x32xf32>
    %111 = arith.truncf %110 : vector<8x32xf32> to vector<8x32xbf16>
    %112 = vector.extract_strided_slice %35 {offsets = [0, 224], sizes = [8, 32], strides = [1, 1]} : vector<8x384xf32> to vector<8x32xf32>
    %113 = arith.truncf %112 : vector<8x32xf32> to vector<8x32xbf16>
    %114 = vector.extract_strided_slice %35 {offsets = [0, 352], sizes = [8, 32], strides = [1, 1]} : vector<8x384xf32> to vector<8x32xf32>
    %115 = arith.truncf %114 : vector<8x32xf32> to vector<8x32xbf16>
    %cst_38 = arith.constant dense<0.000000e+00> : vector<8x8xf32>
    %116 = tpu.matmul %111, %113, %cst_38 {dimension_numbers = #tpu.dot_dimension_numbers<[1], [1], [0], [0], [0, 0, 1, 0], [], []>} : vector<8x32xbf16>, vector<8x32xbf16>, vector<8x8xf32> -> vector<8x8xf32>
    %cst_39 = arith.constant -1.000000e+30 : f32
    %117 = vector.broadcast %cst_39 : f32 to vector<8x8xf32>
    %118 = arith.select %38, %116, %117 : vector<8x8xi1>, vector<8x8xf32>
    %cst_40 = arith.constant dense<0xFF800000> : vector<8xf32>
    %119 = vector.multi_reduction <maximumf>, %118, %cst_40 [1] : vector<8x8xf32> to vector<8xf32>
    %120 = vector.shape_cast %119 : vector<8xf32> to vector<8x1xf32>
    %121 = vector.broadcast %120 : vector<8x1xf32> to vector<8x8xf32>
    %122 = arith.subf %118, %121 : vector<8x8xf32>
    %123 = math.exp %122 : vector<8x8xf32>
    %cst_41 = arith.constant dense<0.000000e+00> : vector<8xf32>
    %124 = vector.multi_reduction <add>, %123, %cst_41 [1] : vector<8x8xf32> to vector<8xf32>
    %125 = vector.shape_cast %124 : vector<8xf32> to vector<8x1xf32>
    %126 = tpu.reciprocal %125 {approx = true} : vector<8x1xf32> -> vector<8x1xf32>
    %127 = vector.broadcast %126 : vector<8x1xf32> to vector<8x8xf32>
    %128 = arith.mulf %123, %127 : vector<8x8xf32>
    %129 = arith.truncf %128 : vector<8x8xf32> to vector<8x8xbf16>
    %cst_42 = arith.constant dense<0.000000e+00> : vector<8x32xf32>
    %130 = tpu.matmul %129, %115, %cst_42 {dimension_numbers = #tpu.dot_dimension_numbers<[1], [0], [0], [1], [0, 0, 1, 1], [], []>} : vector<8x8xbf16>, vector<8x32xbf16>, vector<8x32xf32> -> vector<8x32xf32>
    %131 = tpu.concatenate %61, %84, %107, %130 in 1 : vector<8x32xf32>, vector<8x32xf32>, vector<8x32xf32>, vector<8x32xf32> -> vector<8x128xf32>
    %132 = arith.truncf %131 : vector<8x128xf32> to vector<8x128xbf16>
    %c0_43 = arith.constant 0 : index
    %c0_44 = arith.constant 0 : index
    %c0_45 = arith.constant 0 : index
    %133 = vector.load %arg7[%c0_43, %c0_44, %c0_45] : memref<1x128x128xbf16, #tpu.memory_space<vmem>>, vector<1x128x128xbf16>
    %134 = vector.shape_cast %133 : vector<1x128x128xbf16> to vector<128x128xbf16>
    %cst_46 = arith.constant dense<0.000000e+00> : vector<8x128xf32>
    %135 = tpu.matmul %132, %134, %cst_46 {dimension_numbers = #tpu.dot_dimension_numbers<[1], [0], [0], [1], [0, 0, 1, 1], [], []>} : vector<8x128xbf16>, vector<128x128xbf16>, vector<8x128xf32> -> vector<8x128xf32>
    %136 = arith.addf %3, %135 : vector<8x128xf32>
    %c0_47 = arith.constant 0 : index
    %c0_48 = arith.constant 0 : index
    %c0_49 = arith.constant 0 : index
    %137 = vector.load %arg8[%c0_47, %c0_48, %c0_49] : memref<1x1x128xf32, #tpu.memory_space<vmem>>, vector<1x1x128xf32>
    %138 = vector.shape_cast %137 : vector<1x1x128xf32> to vector<1x128xf32>
    %139 = vector.broadcast %138 : vector<1x128xf32> to vector<8x128xf32>
    %140 = arith.addf %136, %139 : vector<8x128xf32>
    %c0_50 = arith.constant 0 : index
    %c0_51 = arith.constant 0 : index
    %c0_52 = arith.constant 0 : index
    %141 = vector.load %arg9[%c0_50, %c0_51, %c0_52] : memref<1x1x128xf32, #tpu.memory_space<vmem>>, vector<1x1x128xf32>
    %142 = vector.shape_cast %141 : vector<1x1x128xf32> to vector<1x128xf32>
    %c0_53 = arith.constant 0 : index
    %c0_54 = arith.constant 0 : index
    %c0_55 = arith.constant 0 : index
    %143 = vector.load %arg10[%c0_53, %c0_54, %c0_55] : memref<1x1x128xf32, #tpu.memory_space<vmem>>, vector<1x1x128xf32>
    %144 = vector.shape_cast %143 : vector<1x1x128xf32> to vector<1x128xf32>
    %cst_56 = arith.constant dense<0.000000e+00> : vector<8xf32>
    %145 = vector.multi_reduction <add>, %140, %cst_56 [1] : vector<8x128xf32> to vector<8xf32>
    %146 = vector.shape_cast %145 : vector<8xf32> to vector<8x1xf32>
    %cst_57 = arith.constant 1.280000e+02 : f32
    %147 = vector.broadcast %cst_57 : f32 to vector<8x1xf32>
    %148 = arith.divf %146, %147 : vector<8x1xf32>
    %149 = vector.broadcast %148 : vector<8x1xf32> to vector<8x128xf32>
    %150 = arith.subf %140, %149 : vector<8x128xf32>
    %151 = arith.mulf %150, %150 : vector<8x128xf32>
    %cst_58 = arith.constant dense<0.000000e+00> : vector<8xf32>
    %152 = vector.multi_reduction <add>, %151, %cst_58 [1] : vector<8x128xf32> to vector<8xf32>
    %153 = vector.shape_cast %152 : vector<8xf32> to vector<8x1xf32>
    %cst_59 = arith.constant 1.280000e+02 : f32
    %154 = vector.broadcast %cst_59 : f32 to vector<8x1xf32>
    %155 = arith.divf %153, %154 : vector<8x1xf32>
    %cst_60 = arith.constant 9.99999974E-6 : f32
    %156 = vector.broadcast %cst_60 : f32 to vector<8x1xf32>
    %157 = arith.addf %155, %156 : vector<8x1xf32>
    %158 = math.rsqrt %157 : vector<8x1xf32>
    %159 = vector.broadcast %158 : vector<8x1xf32> to vector<8x128xf32>
    %160 = arith.mulf %150, %159 : vector<8x128xf32>
    %161 = vector.broadcast %142 : vector<1x128xf32> to vector<8x128xf32>
    %162 = arith.mulf %160, %161 : vector<8x128xf32>
    %163 = vector.broadcast %144 : vector<1x128xf32> to vector<8x128xf32>
    %164 = arith.addf %162, %163 : vector<8x128xf32>
    %165 = arith.truncf %164 : vector<8x128xf32> to vector<8x128xbf16>
    %c0_61 = arith.constant 0 : index
    %c0_62 = arith.constant 0 : index
    %c0_63 = arith.constant 0 : index
    %166 = vector.load %arg11[%c0_61, %c0_62, %c0_63] : memref<1x128x512xbf16, #tpu.memory_space<vmem>>, vector<1x128x512xbf16>
    %167 = vector.shape_cast %166 : vector<1x128x512xbf16> to vector<128x512xbf16>
    %cst_64 = arith.constant dense<0.000000e+00> : vector<8x512xf32>
    %168 = tpu.matmul %165, %167, %cst_64 {dimension_numbers = #tpu.dot_dimension_numbers<[1], [0], [0], [1], [0, 0, 1, 1], [], []>} : vector<8x128xbf16>, vector<128x512xbf16>, vector<8x512xf32> -> vector<8x512xf32>
    %c0_65 = arith.constant 0 : index
    %c0_66 = arith.constant 0 : index
    %c0_67 = arith.constant 0 : index
    %169 = vector.load %arg12[%c0_65, %c0_66, %c0_67] : memref<1x1x512xf32, #tpu.memory_space<vmem>>, vector<1x1x512xf32>
    %170 = vector.shape_cast %169 : vector<1x1x512xf32> to vector<1x512xf32>
    %171 = vector.broadcast %170 : vector<1x512xf32> to vector<8x512xf32>
    %172 = arith.addf %168, %171 : vector<8x512xf32>
    %cst_68 = arith.constant 5.000000e-01 : f32
    %173 = vector.broadcast %cst_68 : f32 to vector<8x512xf32>
    %174 = arith.mulf %173, %172 : vector<8x512xf32>
    %cst_69 = arith.constant 4.471500e-02 : f32
    %175 = vector.broadcast %cst_69 : f32 to vector<8x512xf32>
    %176 = arith.mulf %175, %172 : vector<8x512xf32>
    %177 = arith.mulf %176, %172 : vector<8x512xf32>
    %178 = arith.mulf %177, %172 : vector<8x512xf32>
    %179 = arith.addf %172, %178 : vector<8x512xf32>
    %cst_70 = arith.constant 0.797884583 : f32
    %180 = vector.broadcast %cst_70 : f32 to vector<8x512xf32>
    %181 = arith.mulf %180, %179 : vector<8x512xf32>
    %182 = math.tanh %181 : vector<8x512xf32>
    %cst_71 = arith.constant 1.000000e+00 : f32
    %183 = vector.broadcast %cst_71 : f32 to vector<8x512xf32>
    %184 = arith.addf %183, %182 : vector<8x512xf32>
    %185 = arith.mulf %174, %184 : vector<8x512xf32>
    %186 = arith.truncf %185 : vector<8x512xf32> to vector<8x512xbf16>
    %c0_72 = arith.constant 0 : index
    %c0_73 = arith.constant 0 : index
    %c0_74 = arith.constant 0 : index
    %187 = vector.load %arg13[%c0_72, %c0_73, %c0_74] : memref<1x512x128xbf16, #tpu.memory_space<vmem>>, vector<1x512x128xbf16>
    %188 = vector.shape_cast %187 : vector<1x512x128xbf16> to vector<512x128xbf16>
    %cst_75 = arith.constant dense<0.000000e+00> : vector<8x128xf32>
    %189 = tpu.matmul %186, %188, %cst_75 {dimension_numbers = #tpu.dot_dimension_numbers<[1], [0], [0], [1], [0, 0, 1, 1], [], []>} : vector<8x512xbf16>, vector<512x128xbf16>, vector<8x128xf32> -> vector<8x128xf32>
    %190 = arith.addf %140, %189 : vector<8x128xf32>
    %c0_76 = arith.constant 0 : index
    %c0_77 = arith.constant 0 : index
    %c0_78 = arith.constant 0 : index
    %191 = vector.load %arg14[%c0_76, %c0_77, %c0_78] : memref<1x1x128xf32, #tpu.memory_space<vmem>>, vector<1x1x128xf32>
    %192 = vector.shape_cast %191 : vector<1x1x128xf32> to vector<1x128xf32>
    %193 = vector.broadcast %192 : vector<1x128xf32> to vector<8x128xf32>
    %194 = arith.addf %190, %193 : vector<8x128xf32>
    %c0_79 = arith.constant 0 : index
    %c0_80 = arith.constant 0 : index
    %195 = vector.load %arg16[%c0_79, %c0_80] : memref<8x128xf32, #tpu.memory_space<vmem>>, vector<8x128xf32>
    tpu.vector_store %arg16[%c0_79, %c0_80], %194 {strides = array<i32>} : memref<8x128xf32, #tpu.memory_space<vmem>>, vector<8x128xf32>,
    %c1_i32 = arith.constant 1 : i32
    %196 = arith.cmpi eq, %arg1, %c1_i32 : i32
    %197 = arith.extui %196 : i1 to i32
    %c0_i32_81 = arith.constant 0 : i32
    %198 = arith.cmpi ne, %197, %c0_i32_81 : i32
    scf.if %198 {
      %c0_82 = arith.constant 0 : index
      %c0_83 = arith.constant 0 : index
      %c0_84 = arith.constant 0 : index
      %199 = vector.load %arg15[%c0_82, %c0_83, %c0_84] : memref<1x8x128xf32, #tpu.memory_space<vmem>>, vector<1x8x128xf32>
      %200 = vector.shape_cast %199 : vector<1x8x128xf32> to vector<8x128xf32>
      %201 = vector.shape_cast %194 : vector<8x128xf32> to vector<1x8x128xf32>
      tpu.vector_store %arg15[%c0_82, %c0_83, %c0_84], %201 {strides = array<i32>} : memref<1x8x128xf32, #tpu.memory_space<vmem>>, vector<1x8x128xf32>,
    } else {
    }
    return
  }
  func.func @transform_0(%arg0: i32, %arg1: i32) -> (i32, i32, i32) {
    %c0_i32 = arith.constant 0 : i32
    %c0_i32_0 = arith.constant 0 : i32
    %c0_i32_1 = arith.constant 0 : i32
    return %arg0, %c0_i32, %c0_i32_0 : i32, i32, i32
  }
  func.func @transform_1(%arg0: i32, %arg1: i32) -> (i32, i32, i32) {
    %c0_i32 = arith.constant 0 : i32
    %c0_i32_0 = arith.constant 0 : i32
    %c0_i32_1 = arith.constant 0 : i32
    return %arg1, %c0_i32, %c0_i32_0 : i32, i32, i32
  }
  func.func @transform_2(%arg0: i32, %arg1: i32) -> (i32, i32, i32) {
    %c0_i32 = arith.constant 0 : i32
    %c0_i32_0 = arith.constant 0 : i32
    %c0_i32_1 = arith.constant 0 : i32
    return %arg1, %c0_i32, %c0_i32_0 : i32, i32, i32
  }
  func.func @transform_3(%arg0: i32, %arg1: i32) -> (i32, i32, i32) {
    %c0_i32 = arith.constant 0 : i32
    %c0_i32_0 = arith.constant 0 : i32
    %c0_i32_1 = arith.constant 0 : i32
    return %arg1, %c0_i32, %c0_i32_0 : i32, i32, i32
  }
  func.func @transform_4(%arg0: i32, %arg1: i32) -> (i32, i32, i32) {
    %c0_i32 = arith.constant 0 : i32
    %c0_i32_0 = arith.constant 0 : i32
    %c0_i32_1 = arith.constant 0 : i32
    return %arg1, %c0_i32, %c0_i32_0 : i32, i32, i32
  }
  func.func @transform_5(%arg0: i32, %arg1: i32) -> (i32, i32, i32) {
    %c0_i32 = arith.constant 0 : i32
    %c0_i32_0 = arith.constant 0 : i32
    %c0_i32_1 = arith.constant 0 : i32
    return %arg1, %c0_i32, %c0_i32_0 : i32, i32, i32
  }
  func.func @transform_6(%arg0: i32, %arg1: i32) -> (i32, i32, i32) {
    %c0_i32 = arith.constant 0 : i32
    %c0_i32_0 = arith.constant 0 : i32
    %c0_i32_1 = arith.constant 0 : i32
    return %arg1, %c0_i32, %c0_i32_0 : i32, i32, i32
  }
  func.func @transform_7(%arg0: i32, %arg1: i32) -> (i32, i32, i32) {
    %c0_i32 = arith.constant 0 : i32
    %c0_i32_0 = arith.constant 0 : i32
    %c0_i32_1 = arith.constant 0 : i32
    return %arg1, %c0_i32, %c0_i32_0 : i32, i32, i32
  }
  func.func @transform_8(%arg0: i32, %arg1: i32) -> (i32, i32, i32) {
    %c0_i32 = arith.constant 0 : i32
    %c0_i32_0 = arith.constant 0 : i32
    %c0_i32_1 = arith.constant 0 : i32
    return %arg1, %c0_i32, %c0_i32_0 : i32, i32, i32
  }
  func.func @transform_9(%arg0: i32, %arg1: i32) -> (i32, i32, i32) {
    %c0_i32 = arith.constant 0 : i32
    %c0_i32_0 = arith.constant 0 : i32
    %c0_i32_1 = arith.constant 0 : i32
    return %arg1, %c0_i32, %c0_i32_0 : i32, i32, i32
  }
  func.func @transform_10(%arg0: i32, %arg1: i32) -> (i32, i32, i32) {
    %c0_i32 = arith.constant 0 : i32
    %c0_i32_0 = arith.constant 0 : i32
    %c0_i32_1 = arith.constant 0 : i32
    return %arg1, %c0_i32, %c0_i32_0 : i32, i32, i32
  }
  func.func @transform_11(%arg0: i32, %arg1: i32) -> (i32, i32, i32) {
    %c0_i32 = arith.constant 0 : i32
    %c0_i32_0 = arith.constant 0 : i32
    %c0_i32_1 = arith.constant 0 : i32
    return %arg1, %c0_i32, %c0_i32_0 : i32, i32, i32
  }
  func.func @transform_12(%arg0: i32, %arg1: i32) -> (i32, i32, i32) {
    %c0_i32 = arith.constant 0 : i32
    %c0_i32_0 = arith.constant 0 : i32
    %c0_i32_1 = arith.constant 0 : i32
    return %arg1, %c0_i32, %c0_i32_0 : i32, i32, i32
  }
  func.func @transform_13(%arg0: i32, %arg1: i32) -> (i32, i32, i32) {
    %c0_i32 = arith.constant 0 : i32
    %c0_i32_0 = arith.constant 0 : i32
    %c0_i32_1 = arith.constant 0 : i32
    return %arg0, %c0_i32, %c0_i32_0 : i32, i32, i32
  }
}

</mosaic_0001>

<bundles_post_ra>
// kernel: cptr_forward.3
= control target key start
LH: loop header
LB: loop body
LE: loop exit
PB: predicated region body
PF: predicated region fallthrough
CT: control target
= control target key end

     0   :  { %9 = vsyncpa [#allocation3], 0  ;;  %s352_s0 = inlined_call_operand.vmem [shape: f32[16,128], index: 0, kind: input, shape index: {}]   ;;  %s353_s1 = inlined_call_operand.vmem [shape: f32[1,128], index: 1, kind: input, shape index: {}]   ;;  %s354_s2 = inlined_call_operand.vmem [shape: f32[1,128], index: 2, kind: input, shape index: {}]   ;;  %s355_s3 = inlined_call_operand.hbm [shape: bf16[128,128], index: 3, kind: input, shape index: {}]   ;;  %s356_s4 = inlined_call_operand.hbm [shape: f32[16,128], index: 4, kind: output, shape index: {}]  }
   0x1   :  { %10 = vsyncpa [#allocation4], 0  ;;  %s21_s17 = sshll.u32 %s355_s3, 4  ;;  %s302_s18 = smov [#allocation2]   ;;  %s22_s17 = int_to_ptr.hbm [resolvable:$true] %s21_s17 }
   0x2   :  { %s23_s19 = sshll.u32 %s302_s18, 4  ;;  %s303_s20 = smov 64   ;;  %s24_s19 = int_to_ptr.vmem [resolvable:$true] %s23_s19 }
   0x3   :  { %s304_s21 = smov 4  }
   0x4   :  { %29 = dma.hbm_to_vmem [thread:$0]  %s22_s17, 1024, %s24_s19, [#allocation3], %s303_s20, %s303_s20, %s304_s21  }
   0x5   :  { %298 = dma.done.wait [#allocation3], 1024  }
   0x6   :  { %299 = vsyncadd [#allocation3], 4294966272  ;;  %v34_v0 = vld [vmem:[%s352_s0] sm:$0xff]  ;;  %v35_v1 = vld [vmem:[%s352_s0 + $0x8] sm:$0xff]  ;;  %v305_v2 = vmov 128.0   ;;  %s306_s28 = smov [#allocation5]  }
   0x7   :  { %38 = vadd.xlane.f32.xlu0 %v34_v0  ;;  %244 = vrcp.f32 %v305_v2  ;;  %v234_v17 = vld [vmem:[#allocation2 + $0x38] sm:$0xff]  ;;  %v233_v18 = vld [vmem:[#allocation2 + $0x30] sm:$0xff]  ;;  %v232_v19 = vld [vmem:[#allocation2 + $0x28] sm:$0xff]  ;;  %s180_s29 = sshll.u32 %s306_s28, 4  ;;  %s182_s5 = sshll.u32 %s356_s4, 4  ;;  %s181_s29 = int_to_ptr.vmem [resolvable:$true] %s180_s29  ;;  %s183_s5 = int_to_ptr.hbm [resolvable:$true] %s182_s5 }
   0x8   :  { %160 = vmatpush.bf16.msra.mxu0 %v234_v17  ;;  %v231_v20 = vld [vmem:[#allocation2 + $0x20] sm:$0xff]  ;;  %v230_v21 = vld [vmem:[#allocation2 + $0x18] sm:$0xff]  ;;  %v229_v22 = vld [vmem:[#allocation2 + $0x10] sm:$0xff]  ;;  %s307_s6 = smov 128   ;;  %s308_s7 = smov 8  }
   0x9   :  { %v228_v23 = vld [vmem:[#allocation2 + $0x8] sm:$0xff]  ;;  %v227_v25 = vld [vmem:[#allocation2] sm:$0xff] }
   0xa   :  { %v242_v44 = vld [vmem:[%s353_s1] ss:$0 sm:$0xff] }
   0xb   :  { %v243_v49 = vld [vmem:[%s354_s2] ss:$0 sm:$0xff] }
   0xc   :  { %161 = vmatpush.bf16.msra.mxu0 %v233_v18 }
   0xd   :  { %v245_v3 = vpop.eup %244 }
   0xe   :  { %v43_v4 = vmul.f32 128.0, %v245_v3  ;;  %vm47_vm0 = vweird.f32 %v245_v3 }
   0xf   :  { %40 = vadd.xlane.f32.xlu0 %v35_v1 }
  0x10   :  { %v44_v5 = vsub.f32 1.0, %v43_v4  ;;  %162 = vmatpush.bf16.msra.mxu0 %v232_v19 }
  0x12   :  { %v45_v6 = vmul.f32 %v245_v3, %v44_v5 }
  0x14   :  { %v46_v7 = vadd.f32 %v245_v3, %v45_v6  ;;  %163 = vmatpush.bf16.msra.mxu0 %v231_v20 }
  0x16   :  { %v48_v8 = vsel %vm47_vm0, %v245_v3, %v46_v7 }
  0x18   :  { %164 = vmatpush.bf16.msra.mxu0 %v230_v21 }
  0x1c   :  { %165 = vmatpush.bf16.msra.mxu0 %v229_v22 }
  0x20   :  { %166 = vmatpush.bf16.msra.mxu0 %v228_v23 }
  0x24   :  { %167 = vmatpush.bf16.msra.mxu0 %v227_v25 }
  0x7a   :  { %v39_v9 = vpop.xlane.xlu0 %38 }
  0x7b   :  { %v49_v10 = vmul.f32 %v48_v8, %v39_v9 }
  0x7d   :  { %v51_v11 = vsub.f32 %v34_v0, %v49_v10 }
  0x7f   :  { %v53_v12 = vmul.f32 %v51_v11, %v51_v11 }
  0x81   :  { %55 = vadd.xlane.f32.xlu1 %v53_v12 }
  0x82   :  { %v41_v13 = vpop.xlane.xlu0 %40 }
  0x83   :  { %v50_v14 = vmul.f32 %v48_v8, %v41_v13 }
  0x85   :  { %v52_v15 = vsub.f32 %v35_v1, %v50_v14 }
  0x87   :  { %v54_v16 = vmul.f32 %v52_v15, %v52_v15 }
  0x89   :  { %57 = vadd.xlane.f32.xlu1 %v54_v16 }
  0xf4   :  { %v56_v24 = vpop.xlane.xlu1 %55 }
  0xf5   :  { %v59_v26 = vmul.f32 %v56_v24, %v48_v8 }
  0xf7   :  { %v61_v27 = vadd.f32 1e-05, %v59_v26 }
  0xf9   :  { %246 = vrsqrt.f32 %v61_v27  ;;  %vm69_vm2 = vweird.f32 %v61_v27 }
  0xfc   :  { %v58_v28 = vpop.xlane.xlu1 %57 }
  0xfd   :  { %v60_v29 = vmul.f32 %v58_v28, %v48_v8 }
  0xff   :  { %v247_v30 = vpop.eup %246  ;;  %v62_v31 = vadd.f32 1e-05, %v60_v29 }
 0x100   :  { %v64_v32 = vmul.f32 %v247_v30, %v61_v27  ;;  %vm70_vm1 = vweird.f32 %v247_v30 }
 0x101   :  { %248 = vrsqrt.f32 %v62_v31  ;;  %vm71_vm3 = vmor %vm69_vm2, %vm70_vm1  ;;  %vm79_vm5 = vweird.f32 %v62_v31 }
 0x102   :  { %v65_v33 = vmul.f32 %v247_v30, %v64_v32 }
 0x104   :  { %v66_v34 = vmul.f32 0.5, %v65_v33 }
 0x106   :  { %v67_v35 = vsub.f32 1.5, %v66_v34 }
 0x107   :  { %v249_v36 = vpop.eup %248 }
 0x108   :  { %v68_v37 = vmul.f32 %v247_v30, %v67_v35  ;;  %v74_v38 = vmul.f32 %v249_v36, %v62_v31  ;;  %vm80_vm4 = vweird.f32 %v249_v36 }
 0x109   :  { %vm81_vm6 = vmor %vm79_vm5, %vm80_vm4 }
 0x10a   :  { %v75_v39 = vmul.f32 %v249_v36, %v74_v38  ;;  %v72_v41 = vsel %vm71_vm3, %v247_v30, %v68_v37 }
 0x10b   :  { %v83_v43 = vmul.f32 %v72_v41, %v51_v11 }
 0x10c   :  { %v76_v40 = vmul.f32 0.5, %v75_v39 }
 0x10d   :  { %v88_v48 = vmul.f32 %v242_v44, %v83_v43 }
 0x10e   :  { %v77_v42 = vsub.f32 1.5, %v76_v40 }
 0x10f   :  { %v93_v51 = vadd.f32 %v243_v49, %v88_v48 }
 0x110   :  { %v78_v45 = vmul.f32 %v249_v36, %v77_v42 }
 0x112   :  { %v82_v46 = vsel %vm81_vm6, %v249_v36, %v78_v45 }
 0x113   :  { %v84_v47 = vmul.f32 %v82_v46, %v52_v15 }
 0x115   :  { %v89_v50 = vmul.f32 %v242_v44, %v84_v47 }
 0x117   :  { %v94_v52 = vadd.f32 %v243_v49, %v89_v50 }
 0x119   :  { %v95_v53 = vpack.c.bf16 %v94_v52, %v93_v51 }
 0x11b   :  { %168 = vmatmul.bf16.vlgmr.msra.gmra.mxu0 %v95_v53 }
 0x198   :  { %v169_v54 = vpop.f32.mrf.mxu0 }
 0x199   :  { %174 = vst [vmem:[#allocation5] sm:$0xff] %v169_v54 }
 0x1a0   :  { %v171_v55 = vpop.f32.mrf.mxu0 }
 0x1a1   :  { %175 = vst [vmem:[#allocation5 + $0x8] sm:$0xff] %v171_v55 }
 0x1a2   :  { %188 = dma.vmem_to_hbm [thread:$0]  %s181_s29, 256, %s183_s5, [#allocation4], %s307_s6, %s307_s6, %s308_s7  }
 0x1a3   :  { %300 = dma.done.wait [#allocation4], 256  }
 0x1a4   :  { %301 = vsyncadd [#allocation4], 4294967040 }
 0x1a5   :  { %193 = vsyncpa [#allocation3], 1 }
 0x1a6   :  { %194 = vsyncpa [#allocation4], 1 }

// kernel: cptr_forward.2
= control target key start
LH: loop header
LB: loop body
LE: loop exit
PB: predicated region body
PF: predicated region fallthrough
CT: control target
= control target key end

     0   :  { %s3521_s0 = inlined_call_operand.vmem [shape: f32[2,8,128], index: 0, kind: input, shape index: {}]   ;;  %s3522_s1 = inlined_call_operand.vmem [shape: f32[2,1,128], index: 1, kind: input, shape index: {}]   ;;  %s3523_s2 = inlined_call_operand.vmem [shape: f32[2,1,128], index: 2, kind: input, shape index: {}]   ;;  %s3524_s3 = inlined_call_operand.hbm [shape: bf16[2,128,384], index: 3, kind: input, shape index: {}]   ;;  %s3525_s4 = inlined_call_operand.vmem [shape: f32[2,1,384], index: 4, kind: input, shape index: {}]   ;;  %s3526_s5 = inlined_call_operand.vmem [shape: bf16[2,128,128], index: 5, kind: input, shape index: {}]   ;;  %s3527_s6 = inlined_call_operand.vmem [shape: f32[2,1,128], index: 6, kind: input, shape index: {}]   ;;  %s3528_s7 = inlined_call_operand.vmem [shape: f32[2,1,128], index: 7, kind: input, shape index: {}]   ;;  %s3529_s8 = inlined_call_operand.vmem [shape: f32[2,1,128], index: 8, kind: input, shape index: {}]   ;;  %s3530_s9 = inlined_call_operand.hbm [shape: bf16[2,128,512], index: 9, kind: input, shape index: {}]   ;;  %s3531_s10 = inlined_call_operand.vmem [shape: f32[2,1,512], index: 10, kind: input, shape index: {}]   ;;  %s3532_s11 = inlined_call_operand.hbm [shape: bf16[2,512,128], index: 11, kind: input, shape index: {}]   ;;  %s3533_s12 = inlined_call_operand.vmem [shape: f32[2,1,128], index: 12, kind: input, shape index: {}]   ;;  %s3534_s13 = inlined_call_operand.vmem [shape: f32[2,8,128], index: 13, kind: output, shape index: {}]  }
   0x1   :  { %3543 = sst [smem:[#allocation19_spill]] %s3521_s0 }
   0x2   :  { %3544 = sst [smem:[#allocation20_spill]] %s3524_s3 }
   0x3   :  { %3545 = sst [smem:[#allocation21_spill]] %s3525_s4 }
   0x4   :  { %3546 = sst [smem:[#allocation22_spill]] %s3526_s5 }
   0x5   :  { %3547 = sst [smem:[#allocation23_spill]] %s3527_s6 }
   0x6   :  { %3548 = sst [smem:[#allocation24_spill]] %s3528_s7 }
   0x7   :  { %3549 = sst [smem:[#allocation25_spill]] %s3529_s8 }
   0x8   :  { %3550 = sst [smem:[#allocation26_spill]] %s3530_s9 }
   0x9   :  { %3551 = sst [smem:[#allocation27_spill]] %s3531_s10 }
   0xa   :  { %3552 = sst [smem:[#allocation28_spill]] %s3532_s11 }
   0xb   :  { %3553 = sst [smem:[#allocation29_spill]] %s3533_s12 }
   0xc   :  { %3554 = sst [smem:[#allocation30_spill]] %s3534_s13 }
   0xd   :  { %18 = vsyncpa [#allocation4], 0 }
   0xe   :  { %20 = vsyncpa [#allocation4 + $0x1], 0 }
   0xf   :  { %21 = vsyncpa [#allocation6], 0 }
  0x10   :  { %23 = vsyncpa [#allocation6 + $0x1], 0  ;;  %s3053_s25 = smov 0   ;;  %s3055_s26 = smov 0  }
  0x11   :  { %s3057_s27 = smov 0   ;;  %s3059_s28 = smov 0  }
  0x12   :  { %s3061_s29 = smov 0   ;;  %s3063_s30 = smov 0  }
  0x13   :  { %s3065_s14 = smov 0   ;;  %s3067_s15 = smov 0  }
  0x14 LB: > { %3555 = sst [smem:[#allocation10_spill]] %s2947_s26  ;;  %s3536_s16 = sadd.s32 4294967295, %s2971_s15   ;;  %s2971_s15 = sphi %s3067_s15, %s29_s15   ;;  %s2967_s14 = sphi %s3065_s14, %s3595_s14   ;;  %s2963_s30 = sphi %s3063_s30, %s3594_s30   ;;  %s2959_s29 = sphi %s3061_s29, %s3593_s29   ;;  %s2955_s28 = sphi %s3059_s28, %s3592_s28   ;;  %s2951_s27 = sphi %s3057_s27, %s3591_s27   ;;  %s2947_s26 = sphi %s3055_s26, %s3590_s26   ;;  %s2943_s25 = sphi %s3053_s25, %s3589_s25  }
  0x15   : > { %3556 = sst [smem:[#allocation11_spill]] %s2951_s27  ;;  %s38_s17 = sadd.s32 1, %s2963_s30 }
  0x16   : > { %3557 = sst [smem:[#allocation12_spill]] %s2963_s30  ;;  %p39_p0 = scmp.ge.s32.totalorder %s38_s17, 2 }
  0x17   : > { %3558 = sst [smem:[#allocation13_spill]] %s2967_s14  ;;  %s41_s18 = sadd.s32 1, %s2967_s14 }
  0x18   : > { %3559 = sst [smem:[#allocation14_spill]] %s2971_s15  ;;  %s126_s19 = sadd.s32 1, %s2951_s27 }
  0x19   : > { %p133_p1 = scmp.ne.s32.totalorder %s2951_s27, %s2947_s26  ;;  %s3597_s17 = smov (%p39_p0, %s38_s17), 0 }
  0x1a   : > { %3560 = sst [smem:[#allocation15_spill]] %s3597_s17  ;;  %s3599_s18 = smov (!%p39_p0, %s41_s18), %s2967_s14 }
  0x1b   : > { %s123_s20 = ssub.s32 %s2963_s30, %s3597_s17  ;;  %p134_p2 = scmp.eq.s32.totalorder %s2971_s15, 0 }
  0x1c   : > { %p43_p3 = scmp.ge.s32.totalorder %s3599_s18, 2  ;;  %p124_p4 = scmp.eq.s32.totalorder %s123_s20, 0 }
  0x1d   : > { %p135_p5 = por %p134_p2, %p133_p1  ;;  %p139_p6 = scmp.ne.s32.totalorder %s2947_s26, %s2943_s25 }
  0x1e   : > { %s3601_s18 = smov (%p43_p3, %s3599_s18), 0  ;;  %p140_p7 = scmp.eq.s32.totalorder %s3536_s16, 0 }
  0x1f   : > { %3561 = sst [smem:[#allocation16_spill]] %s3601_s18  ;;  %p2700_p8 = scmp.lt.s32.totalorder %s2971_s15, 4 }
  0x20   : > { %s3107_s21 = scalar_select %p124_p4, %s2951_s27, %s126_s19  }
  0x21   : > { %s3113_s22 = sand.u32 1, %s2951_s27   ;;  %p3115_p9 = por %p140_p7, %p139_p6 }
  0x22   : > { %3562 = sst [smem:[#allocation17_spill]] %s3107_s21  ;;  %s497_s24 = sand.u32 1, %s2971_s15  }
  0x23   : > { %p3120_p10 = pnand %p2700_p8, %p135_p5  ;;  %s2171_s25 = sshll.u32 %s3113_s22, 8 }
  0x24   : > { %s2581_s20 = sshll.u32 %s2963_s30, 8  ;;  %s3565_s9 = sld [smem:[#allocation26_spill]] }
  0x25   : > { %s501_s14 = scalar_lea.vmem [#allocation5], %s2171_s25  ;;  %s3129_s13 = scalar_lea.sflag [#allocation6], %s497_s24 }
  0x26   : > { %s509_s21 = sshll.u32 %s501_s14, 4  ;;  %s2973_s10 = smov 256   ;;  %s510_s21 = int_to_ptr.vmem [resolvable:$true] %s509_s21 }
  0x27   : > { %s2974_s12 = smov 16   ;;  %s3566_s11 = sld [smem:[#allocation28_spill]] }
  0x28   : > { %s530_s19 = scalar_lea.vmem [#allocation7], %s2171_s25  ;;  %p2177_p11 = scmp.ge.s32.totalorder %s2971_s15, 1 }
  0x29   : > { %p552_p12 = scmp.lt.s32.totalorder %s2971_s15, 5  ;;  %s3568_s3 = sld [smem:[#allocation20_spill]] }
  0x2a   : > { %s506_s16 = scalar_lea.hbm %s3565_s9, %s2581_s20  ;;  %s538_s9 = sshll.u32 %s530_s19, 4  ;;  %s539_s9 = int_to_ptr.vmem [resolvable:$true] %s538_s9 }
  0x2b   : > { %s507_s27 = sshll.u32 %s506_s16, 4  ;;  %p3139_p13 = pnand %p2177_p11, %p552_p12  ;;  %s508_s27 = int_to_ptr.hbm [resolvable:$true] %s507_s27 }
  0x2c   : > { %2696 = dma.hbm_to_vmem [thread:$0]  (!%p3120_p10), %s508_s27, 4096, %s510_s21, %s3129_s13, %s2973_s10, %s2973_s10, %s2974_s12  }
  0x2d   : > { %s535_s18 = scalar_lea.hbm %s3566_s11, %s2581_s20  ;;  %s2680_s10 = smul.u32 192, %s3113_s22 }
  0x2e   : > { %s536_s14 = sshll.u32 %s535_s18, 4  ;;  %s2681_s12 = smul.u32 192, %s2963_s30  ;;  %s537_s14 = int_to_ptr.hbm [resolvable:$true] %s536_s14 }
  0x2f   : > { %s446_s21 = scalar_lea.vmem [#allocation3], %s2680_s10  ;;  %s443_s20 = scalar_lea.sflag [#allocation4], %s3113_s22 }
  0x30   : > { %s451_s8 = scalar_lea.hbm %s3568_s3, %s2681_s12  ;;  %s454_s24 = sshll.u32 %s446_s21, 4  ;;  %s455_s24 = int_to_ptr.vmem [resolvable:$true] %s454_s24 }
  0x31   : > { %s452_s25 = sshll.u32 %s451_s8, 4  ;;  %s2975_s18 = smov 192   ;;  %s453_s25 = int_to_ptr.hbm [resolvable:$true] %s452_s25 }
  0x32   : > { %s2976_s19 = smov 12   ;;  %s2977_s11 = smov 64  }
  0x33   : > { %2693 = dma.hbm_to_vmem [thread:$0]  (!%p3120_p10), %s453_s25, 3072, %s455_s24, %s443_s20, %s2975_s18, %s2975_s18, %s2976_s19  }
  0x34   : > { %s2978_s5 = smov 4   ;;  %556 = sbr.rel (%p3139_p13) target bundleno = 2245 (0x8c5), region = 72 }
  0x35   : > { %2699 = dma.hbm_to_vmem [thread:$0]  (!%p3120_p10), %s537_s14, 4096, %s539_s9, %s3129_s13, %s2977_s11, %s2977_s11, %s2978_s5  }
  0x39   : > { %s3157_s12 = sand.u32 1, %s2947_s26  }
  0x3a   : > { %s2682_s10 = smul.u32 192, %s3157_s12  ;;  %s559_s27 = scalar_lea.sflag [#allocation4], %s3157_s12 }
  0x3c   : > { %s3161_s22 = scalar_lea.vmem [#allocation3], %s2682_s10 }
  0x3d   : > { %2934 = dma.done.wait (%p3115_p9), %s559_s27, 3072  }
  0x3e   : > { %2936 = vsyncadd (%p3115_p9), %s559_s27, 4294964224  ;;  %s3569_s5 = sadd.s32 4294967295, %s2971_s15   ;;  %s2178_s11 = sshll.u32 %s3157_s12, 8 }
  0x3f   : > { %s568_s9 = sand.u32 1, %s3569_s5   ;;  %s3170_s17 = scalar_lea.vmem [#allocation5], %s2178_s11 }
  0x40   : > { %s569_s13 = scalar_lea.sflag [#allocation6], %s568_s9  ;;  %3570 = sst [smem:[#allocation18_spill]] %s3170_s17 }
  0x41   : > { %2938 = dma.done.wait (%p3115_p9), %s569_s13, 8192  }
  0x42   : > { %2940 = vsyncadd (%p3115_p9), %s569_s13, 4294959104  ;;  %p670_p0 = scmp.lt.s32.totalorder %s2959_s29, 1  ;;  %p674_p1 = scmp.lt.s32.totalorder %s2955_s28, 1 }
  0x43   : > { %s3571_s0 = sld [smem:[#allocation19_spill]]  ;;  %s3232_s25 = scalar_lea.vmem [#allocation7], %s2178_s11 }
  0x44   : > { %s3603_s29 = smov (!%p670_p0, %s2959_s29), 1  ;;  %s3573_s4 = sld [smem:[#allocation21_spill]] }
  0x45   : > { %s3180_s14 = scalar_select %p674_p1, %s2955_s28, 1 }
  0x46   : > { %s2180_s23 = sshll.u32 %s3603_s29, 3  ;;  %s3575_s20 = sld [smem:[#allocation24_spill]] }
  0x47   : > { %s2683_s12 = smul.u32 3, %s3180_s14  ;;  %s2583_s10 = sshll.u32 %s3180_s14, 6 }
  0x48   : > { %s3576_s26 = sld [smem:[#allocation25_spill]]  ;;  %s2183_s27 = sshll.u32 %s3180_s14, 2 }
  0x49   : > { %s673_s8 = scalar_lea.vmem %s3571_s0, %s2180_s23  ;;  %s3574_s0 = sld [smem:[#allocation22_spill]] }
  0x4a   : > { %s3202_s3 = scalar_lea.vmem %s3573_s4, %s2683_s12  ;;  %s3577_s6 = sld [smem:[#allocation29_spill]] }
  0x4b   : > { %s3578_s4 = sld [smem:[#allocation27_spill]]  ;;  %p2185_p2 = scmp.ne.s32.totalorder %s2955_s28, 0 }
  0x4c   : > { %s694_s18 = scalar_lea.vmem %s3575_s20, %s3180_s14  ;;  %s3579_s16 = sld [smem:[#allocation30_spill]] }
  0x4e   : > { %s697_s15 = scalar_lea.vmem %s3576_s26, %s3180_s14  ;;  %713 = sbr.rel (%p2185_p2) target bundleno = 85 (0x55), region = 88 }
  0x4f   : > { %s3207_s21 = scalar_lea.vmem %s3574_s0, %s2583_s10 }
  0x50   : > { %s704_s13 = scalar_lea.vmem %s3577_s6, %s3180_s14 }
  0x51   : > { %s3225_s17 = scalar_lea.vmem %s3578_s4, %s2183_s27 }
  0x52   : > { %s3230_s7 = scalar_lea.vmem %s3579_s16, %s2180_s23 }
  0x53   : > { %v714_v0 = vld [vmem:[%s673_s8] sm:$0xff] }
  0x54   : > { %715 = vst [vmem:[#allocation2] sm:$0xff] %v714_v0 }
  0x55 PF: > { %v2979_v2 = vmov 128.0   ;;  %v2272_v3 = vld [vmem:[%s3161_s22 + $0xa8] sm:$0xf]  ;;  %v2606_v4 = vld [vmem:[%s3161_s22 + $0xb0] sm:$0xf0]  ;;  %s3580_s26 = scalar_lea.vmem %s3522_s1, %s3180_s14  ;;  %s3581_s11 = scalar_lea.vmem %s3523_s2, %s3180_s14  ;;  %vm971_vm4 = vcmask 261120  }
  0x56   : > { %2781 = vrcp.f32 %v2979_v2  ;;  %v2605_v5 = vld [vmem:[%s3161_s22 + $0xac] sm:$0xf]  ;;  %v2273_v6 = vor.u32 %v2606_v4, %v2272_v3  ;;  %v2274_v7 = vld [vmem:[%s3161_s22 + $0xb4] sm:$0xf0]  ;;  %v2280_v8 = vld [vmem:[%s3161_s22 + $0xb0] sm:$0xf] }
  0x57   : > { %v2607_v9 = vld [vmem:[%s3161_s22 + $0xb8] sm:$0xf0]  ;;  %v2277_v10 = vor.u32 %v2605_v5, %v2274_v7  ;;  %v2260_v22 = vld [vmem:[%s3161_s22 + $0x90] sm:$0xf]  ;;  %v2602_v24 = vld [vmem:[%s3161_s22 + $0x94] sm:$0xf] }
  0x58   : > { %v2281_v11 = vor.u32 %v2607_v9, %v2280_v8  ;;  %923 = vmatpush.bf16.msra.mxu0 %v2273_v6  ;;  %v2603_v23 = vld [vmem:[%s3161_s22 + $0x98] sm:$0xf0]  ;;  %v2262_v26 = vld [vmem:[%s3161_s22 + $0x9c] sm:$0xf0]  ;;  %v2268_v27 = vld [vmem:[%s3161_s22 + $0x98] sm:$0xf] }
  0x59   : > { %936 = vmatpush.bf16.msra.mxu1 %v2277_v10  ;;  %v2261_v25 = vor.u32 %v2603_v23, %v2260_v22  ;;  %v2604_v28 = vld [vmem:[%s3161_s22 + $0xa0] sm:$0xf0]  ;;  %v2265_v29 = vor.u32 %v2602_v24, %v2262_v26  ;;  %v2248_v31 = vld [vmem:[%s3161_s22 + $0x78] sm:$0xf]  ;;  %v2599_v33 = vld [vmem:[%s3161_s22 + $0x7c] sm:$0xf] }
  0x5a   : > { %949 = vmatpush.bf16.msra.mxu2 %v2281_v11  ;;  %v2269_v30 = vor.u32 %v2604_v28, %v2268_v27  ;;  %v2600_v32 = vld [vmem:[%s3161_s22 + $0x80] sm:$0xf0]  ;;  %v2250_v35 = vld [vmem:[%s3161_s22 + $0x84] sm:$0xf0]  ;;  %v2256_v36 = vld [vmem:[%s3161_s22 + $0x80] sm:$0xf] }
  0x5b   : > { %v3235_v1 = vld [vmem:[#allocation2] sm:$0xff]  ;;  %v2249_v34 = vor.u32 %v2600_v32, %v2248_v31  ;;  %v2601_v37 = vld [vmem:[%s3161_s22 + $0x88] sm:$0xf0]  ;;  %v2253_v38 = vor.u32 %v2599_v33, %v2250_v35  ;;  %v2236_v40 = vld [vmem:[%s3161_s22 + $0x60] sm:$0xf]  ;;  %s2980_s23 = smov 64  }
  0x5c   : > { %719 = vadd.xlane.f32.xlu0 %v3235_v1  ;;  %v2782_v12 = vpop.eup %2781  ;;  %924 = vmatpush.bf16.msra.mxu0 %v2261_v25  ;;  %v2257_v39 = vor.u32 %v2601_v37, %v2256_v36  ;;  %v2597_v41 = vld [vmem:[%s3161_s22 + $0x68] sm:$0xf0]  ;;  %v2596_v42 = vld [vmem:[%s3161_s22 + $0x64] sm:$0xf]  ;;  %v2238_v44 = vld [vmem:[%s3161_s22 + $0x6c] sm:$0xf0] }
  0x5d   : > { %v722_v13 = vmul.f32 128.0, %v2782_v12  ;;  %vm726_vm0 = vweird.f32 %v2782_v12  ;;  %937 = vmatpush.bf16.msra.mxu1 %v2265_v29  ;;  %v2237_v43 = vor.u32 %v2597_v41, %v2236_v40  ;;  %v2244_v45 = vld [vmem:[%s3161_s22 + $0x68] sm:$0xf]  ;;  %v2598_v46 = vld [vmem:[%s3161_s22 + $0x70] sm:$0xf0]  ;;  %v2241_v47 = vor.u32 %v2596_v42, %v2238_v44  ;;  %s2981_s8 = smov 96  }
  0x5e   : > { %950 = vmatpush.bf16.msra.mxu2 %v2269_v30  ;;  %v2245_v48 = vor.u32 %v2598_v46, %v2244_v45  ;;  %v2224_v49 = vld [vmem:[%s3161_s22 + $0x48] sm:$0xf]  ;;  %v2594_v50 = vld [vmem:[%s3161_s22 + $0x50] sm:$0xf0]  ;;  %v2593_v51 = vld [vmem:[%s3161_s22 + $0x4c] sm:$0xf] }
  0x5f   : > { %v723_v14 = vsub.f32 1.0, %v722_v13  ;;  %v2225_v52 = vor.u32 %v2594_v50, %v2224_v49  ;;  %v2226_v53 = vld [vmem:[%s3161_s22 + $0x54] sm:$0xf0]  ;;  %v2232_v54 = vld [vmem:[%s3161_s22 + $0x50] sm:$0xf]  ;;  %vm1008_vm5 = vcmask 1043456  }
  0x60   : > { %925 = vmatpush.bf16.msra.mxu0 %v2249_v34  ;;  %v2595_v55 = vld [vmem:[%s3161_s22 + $0x58] sm:$0xf0]  ;;  %v2229_v56 = vor.u32 %v2593_v51, %v2226_v53  ;;  %v2212_v58 = vld [vmem:[%s3161_s22 + $0x30] sm:$0xf]  ;;  %v2590_v60 = vld [vmem:[%s3161_s22 + $0x34] sm:$0xf] }
  0x61   : > { %v724_v15 = vmul.f32 %v2782_v12, %v723_v14  ;;  %938 = vmatpush.bf16.msra.mxu1 %v2253_v38  ;;  %v2233_v57 = vor.u32 %v2595_v55, %v2232_v54  ;;  %v2591_v59 = vld [vmem:[%s3161_s22 + $0x38] sm:$0xf0]  ;;  %v2214_v62 = vld [vmem:[%s3161_s22 + $0x3c] sm:$0xf0]  ;;  %v2220_v63 = vld [vmem:[%s3161_s22 + $0x38] sm:$0xf] }
  0x62   : > { %951 = vmatpush.bf16.msra.mxu2 %v2257_v39  ;;  %v2213_v61 = vor.u32 %v2591_v59, %v2212_v58  ;;  %v2592_v0 = vld [vmem:[%s3161_s22 + $0x40] sm:$0xf0]  ;;  %v2217_v2 = vor.u32 %v2590_v60, %v2214_v62  ;;  %v2200_v4 = vld [vmem:[%s3161_s22 + $0x18] sm:$0xf]  ;;  %v2587_v6 = vld [vmem:[%s3161_s22 + $0x1c] sm:$0xf] }
  0x63   : > { %v725_v16 = vadd.f32 %v2782_v12, %v724_v15  ;;  %v2221_v3 = vor.u32 %v2592_v0, %v2220_v63  ;;  %v2588_v5 = vld [vmem:[%s3161_s22 + $0x20] sm:$0xf0]  ;;  %v2202_v8 = vld [vmem:[%s3161_s22 + $0x24] sm:$0xf0]  ;;  %v2208_v9 = vld [vmem:[%s3161_s22 + $0x20] sm:$0xf]  ;;  %v962_v0 = vlaneseq }
  0x64   : > { %926 = vmatpush.bf16.msra.mxu0 %v2237_v43  ;;  %v2201_v7 = vor.u32 %v2588_v5, %v2200_v4  ;;  %v2589_v10 = vld [vmem:[%s3161_s22 + $0x28] sm:$0xf0]  ;;  %v2205_v11 = vor.u32 %v2587_v6, %v2202_v8  ;;  %v2188_v13 = vld [vmem:[%s3161_s22] sm:$0xf]  ;;  %v2584_v15 = vld [vmem:[%s3161_s22 + $0x4] sm:$0xf] }
  0x65   : > { %v3244_v17 = vsel %vm726_vm0, %v2782_v12, %v725_v16  ;;  %939 = vmatpush.bf16.msra.mxu1 %v2241_v47  ;;  %v2209_v12 = vor.u32 %v2589_v10, %v2208_v9  ;;  %v2585_v14 = vld [vmem:[%s3161_s22 + $0x8] sm:$0xf0]  ;;  %v2775_v33 = vld [vmem:[%s3580_s26] ss:$0 sm:$0xff]  ;;  %vm992_vm7 = vcmask 64512   ;;  %s3582_s19 = sld [smem:[#allocation18_spill]] }
  0x66   : > { %952 = vmatpush.bf16.msra.mxu2 %v2245_v48  ;;  %v2189_v16 = vor.u32 %v2585_v14, %v2188_v13  ;;  %v2776_v36 = vld [vmem:[%s3581_s11] ss:$0 sm:$0xff]  ;;  %vm1212_vm8 = vcmask 523264   ;;  %vm1214_vm9 = vcmask 785408   ;;  %s3583_s24 = sld [smem:[#allocation23_spill]]  ;;  %p2578_p3 = scmp.ne.s32.totalorder %s2955_s28, 1 }
  0x67   : > { %v787_v40 = vld [vmem:[%s3202_s3] sm:$0x7]  ;;  %s2982_s3 = smov 32  }
  0x68   : > { %927 = vmatpush.bf16.msra.mxu0 %v2225_v52  ;;  %v790_v41 = vperm.slane %v787_v40, 1  ;;  %v789_v42 = vperm.slane %v787_v40, 0  ;;  %v791_v47 = vperm.slane %v787_v40, 2 }
  0x69   : > { %940 = vmatpush.bf16.msra.mxu1 %v2229_v56 }
  0x6a   : > { %953 = vmatpush.bf16.msra.mxu2 %v2233_v57 }
  0x6c   : > { %928 = vmatpush.bf16.msra.mxu0 %v2213_v61  ;;  %s3584_s20 = scalar_lea.vmem %s3583_s24, %s3180_s14 }
  0x6d   : > { %941 = vmatpush.bf16.msra.mxu1 %v2217_v2  ;;  %v963_v2 = vshrl.u32 %v962_v0, 7 }
  0x6e   : > { %954 = vmatpush.bf16.msra.mxu2 %v2221_v3  ;;  %v965_v3 = vand.u32 127, %v962_v0 }
  0x70   : > { %929 = vmatpush.bf16.msra.mxu0 %v2201_v7  ;;  %vm966_vm6 = vcmp.le.s32.totalorder %v965_v3, %v963_v2 }
  0x71   : > { %942 = vmatpush.bf16.msra.mxu1 %v2205_v11 }
  0x72   : > { %955 = vmatpush.bf16.msra.mxu2 %v2209_v12 }
  0x74   : > { %930 = vmatpush.bf16.msra.mxu0 %v2189_v16 }
  0xcf   : > { %v720_v18 = vpop.xlane.xlu0 %719 }
  0xd0   : > { %v728_v19 = vmul.f32 %v3244_v17, %v720_v18  ;;  %v2190_v18 = vld [vmem:[%s3161_s22 + $0xc] sm:$0xf0] }
  0xd1   : > { %v2193_v22 = vor.u32 %v2584_v15, %v2190_v18 }
  0xd2   : > { %v3248_v20 = vsub.f32 %v3235_v1, %v728_v19  ;;  %v2196_v19 = vld [vmem:[%s3161_s22 + $0x8] sm:$0xf] }
  0xd3   : > { %943 = vmatpush.bf16.msra.mxu1 %v2193_v22 }
  0xd4   : > { %v730_v21 = vmul.f32 %v3248_v20, %v3248_v20 }
  0xd6   : > { %731 = vadd.xlane.f32.xlu0 %v730_v21  ;;  %v2586_v21 = vld [vmem:[%s3161_s22 + $0x10] sm:$0xf0] }
  0xd7   : > { %v2197_v23 = vor.u32 %v2586_v21, %v2196_v19 }
  0xd9   : > { %956 = vmatpush.bf16.msra.mxu2 %v2197_v23 }
 0x149   : > { %v732_v24 = vpop.xlane.xlu0 %731 }
 0x14a   : > { %v733_v25 = vmul.f32 %v732_v24, %v3244_v17 }
 0x14c   : > { %v734_v26 = vadd.f32 1e-05, %v733_v25 }
 0x14e   : > { %2783 = vrsqrt.f32 %v734_v26  ;;  %vm741_vm2 = vweird.f32 %v734_v26 }
 0x154   : > { %v2784_v27 = vpop.eup %2783 }
 0x155   : > { %v736_v28 = vmul.f32 %v2784_v27, %v734_v26  ;;  %vm742_vm1 = vweird.f32 %v2784_v27 }
 0x156   : > { %vm743_vm3 = vmor %vm741_vm2, %vm742_vm1 }
 0x157   : > { %v737_v29 = vmul.f32 %v2784_v27, %v736_v28 }
 0x159   : > { %v738_v30 = vmul.f32 0.5, %v737_v29 }
 0x15b   : > { %v739_v31 = vsub.f32 1.5, %v738_v30 }
 0x15d   : > { %v740_v32 = vmul.f32 %v2784_v27, %v739_v31 }
 0x15f   : > { %v744_v34 = vsel %vm743_vm3, %v2784_v27, %v740_v32 }
 0x160   : > { %v745_v35 = vmul.f32 %v744_v34, %v3248_v20 }
 0x162   : > { %v749_v37 = vmul.f32 %v2775_v33, %v745_v35 }
 0x164   : > { %v753_v38 = vadd.f32 %v2776_v36, %v749_v37 }
 0x166   : > { %v754_v39 = vpack.c.bf16 %v753_v38, %v753_v38 }
 0x168   : > { %931 = vmatmul.bf16.vlgmr.msra.gmra.mxu0 %v754_v39  ;;  %944 = vmatmul.bf16.vlgmr.msra.gmra.mxu1 %v754_v39 }
 0x169   : > { %957 = vmatmul.bf16.vlgmr.msra.gmra.mxu2 %v754_v39 }
 0x1e5   : > { %v932_v43 = vpop.f32.mrf.mxu0  ;;  %v945_v44 = vpop.f32.mrf.mxu1 }
 0x1e6   : > { %v946_v45 = vadd.f32 %v945_v44, %v790_v41  ;;  %v933_v46 = vadd.f32 %v932_v43, %v789_v42 }
 0x1e8   : > { %v969_v20 = vpack.c.bf16 %v946_v45, %v946_v45  ;;  %v967_v49 = vmul.f32 0.17677669, %v933_v46 }
 0x1ea   : > { %1087 = vrot.lane.b32.xlu0 %v969_v20, %s2980_s23  ;;  %1029 = vrot.lane.b32.xlu2 %v969_v20, %s2981_s8  ;;  %v976_v48 = vsel %vm971_vm4, %v969_v20, 0  ;;  %v968_v55 = vpack.c.bf16 %v967_v49, %v967_v49 }
 0x1eb   : > { %985 = vmatpush.bf16.xpose.msra.mxu3 %v976_v48 }
 0x1ec   : > { %v958_v50 = vpop.f32.mrf.mxu2 }
 0x1ed   : > { %v959_v51 = vadd.f32 %v958_v50, %v791_v47  ;;  %v934_v52 = vpop.f32.mrf.mxu0  ;;  %v947_v53 = vpop.f32.mrf.mxu1 }
 0x1ef   : > { %v3310_v54 = vpack.c.bf16 %v959_v51, %v959_v51 }
 0x1f1   : > { %v1010_v56 = vsel %vm1008_vm5, %v3310_v54, 0 }
 0x1f2   : > { %1026 = vrot.lane.b32.xlu2 %v968_v55, %s2981_s8  ;;  %2282 = vmatmul.msk.bf16.vlgmr.msra.gmra.mxu3 %vm971_vm4, %v968_v55 }
 0x1f3   : > { %1019 = vmatpush.bf16.msrb.mxu3 %v1010_v56 }
 0x1f4   : > { %v960_v57 = vpop.f32.mrf.mxu2 }
 0x1fa   : > { %1085 = vrot.lane.b32.xlu2 %v968_v55, %s2980_s23 }
 0x202   : > { %1142 = vrot.lane.b32.xlu2 %v968_v55, %s2982_s3 }
 0x244   : > { %v1030_v58 = vpop.permute.xlu2 %1029 }
 0x245   : > { %v1035_v59 = vsel %vm971_vm4, %v1030_v58, 0 }
 0x246   : > { %1044 = vmatpush.bf16.xpose.msra.mxu3 %v1035_v59 }
 0x24c   : > { %v1027_v60 = vpop.permute.xlu2 %1026 }
 0x254   : > { %v1086_v63 = vpop.permute.xlu2 %1085 }
 0x25c   : > { %v1088_v61 = vpop.permute.xlu0 %1087  ;;  %v1143_v28 = vpop.permute.xlu2 %1142 }
 0x25d   : > { %v1093_v62 = vsel %vm971_vm4, %v1088_v61, 0 }
 0x25e   : > { %1102 = vmatpush.bf16.xpose.msrb.mxu2 %v1093_v62 }
 0x265   : > { %2286 = vmatmul.msk.bf16.vlgmr.msrb.gmra.mxu2 %vm971_vm4, %v1086_v63 }
 0x275   : > { %v987_v4 = vpop.f32.mrf.mxu3 }
 0x276   : > { %v991_v5 = vsel %vm966_vm6, %v987_v4, -1e+30 }
 0x277   : > { %v993_v6 = vsel %vm992_vm7, %v991_v5, -inf }
 0x278   : > { %994 = vmax.xlane.f32.xlu1 %v993_v6 }
 0x27d   : > { %v989_v7 = vpop.f32.mrf.mxu3 }
 0x2e8   : > { %v1104_v8 = vpop.f32.mrf.mxu2 }
 0x2e9   : > { %v1108_v9 = vsel %vm966_vm6, %v1104_v8, -1e+30  ;;  %v2615_v8 = vld [vmem:[%s3207_s21 + $0x38] sm:$0xff] }
 0x2ea   : > { %v1109_v10 = vsel %vm992_vm7, %v1108_v9, -inf  ;;  %1281 = vmatpush.bf16.msrb.mxu1 %v2615_v8  ;;  %v2388_v8 = vld [vmem:[%s3582_s19 + $0x80] sm:$0xf] }
 0x2eb   : > { %1110 = vmax.xlane.f32.xlu0 %v1109_v10  ;;  %v995_v11 = vpop.xlane.xlu1 %994 }
 0x2ec   : > { %v996_v12 = vsub.f32 %v991_v5, %v995_v11  ;;  %v2613_v11 = vld [vmem:[%s3207_s21 + $0x28] sm:$0xff] }
 0x2ee   : > { %v997_v13 = vmul.f32 1.442695, %v996_v12  ;;  %v2612_v12 = vld [vmem:[%s3207_s21 + $0x20] sm:$0xff] }
 0x2f0   : > { %v1106_v14 = vpop.f32.mrf.mxu2  ;;  %2785 = vpow2.f32 %v997_v13  ;;  %v2611_v13 = vld [vmem:[%s3207_s21 + $0x18] sm:$0xff] }
 0x2f6   : > { %v2786_v15 = vpop.eup %2785 }
 0x2f7   : > { %v999_v16 = vsel %vm992_vm7, %v2786_v15, 0.0 }
 0x2f8   : > { %1000 = vadd.xlane.f32.xlu1 %v999_v16  ;;  %v2610_v16 = vld [vmem:[%s3207_s21 + $0x10] sm:$0xff] }
 0x2ff   : > { %1064 = vrot.lane.b32.xlu0 %v3310_v54, %s2981_s8 }
 0x311   : > { %1144 = vrot.lane.b32.xlu1 %v969_v20, %s2982_s3 }
 0x35e   : > { %v1111_v18 = vpop.xlane.xlu0 %1110 }
 0x35f   : > { %v1112_v31 = vsub.f32 %v1108_v9, %v1111_v18  ;;  %v2614_v9 = vld [vmem:[%s3207_s21 + $0x30] sm:$0xff]  ;;  %v2609_v18 = vld [vmem:[%s3207_s21 + $0x8] sm:$0xff] }
 0x360   : > { %1282 = vmatpush.bf16.msrb.mxu1 %v2614_v9  ;;  %v2634_v9 = vld [vmem:[%s3582_s19 + $0x8c] sm:$0xf0] }
 0x361   : > { %v1113_v32 = vmul.f32 1.442695, %v1112_v31 }
 0x364   : > { %1283 = vmatpush.bf16.msrb.mxu1 %v2613_v11  ;;  %v2389_v11 = vor.u32 %v2634_v9, %v2388_v8  ;;  %v2671_v8 = vld [vmem:[%s3232_s25 + $0xb8] sm:$0xff] }
 0x365   : > { %v2679_v9 = vld [vmem:[%s3232_s25 + $0xf8] sm:$0xff] }
 0x368   : > { %1284 = vmatpush.bf16.msrb.mxu1 %v2612_v12  ;;  %v2390_v12 = vld [vmem:[%s3582_s19 + $0x90] sm:$0xf0] }
 0x36b   : > { %v1001_v19 = vpop.xlane.xlu1 %1000 }
 0x36c   : > { %2787 = vrcp.f32 %v1001_v19  ;;  %1285 = vmatpush.bf16.msrb.mxu1 %v2611_v13  ;;  %v2608_v19 = vld [vmem:[%s3207_s21] sm:$0xff]  ;;  %v2396_v13 = vld [vmem:[%s3582_s19 + $0x88] sm:$0xf] }
 0x36d   : > { %2789 = vpow2.f32 %v1113_v32 }
 0x370   : > { %1286 = vmatpush.bf16.msrb.mxu1 %v2610_v16 }
 0x371   : > { %v1065_v21 = vpop.permute.xlu0 %1064 }
 0x372   : > { %v1070_v22 = vsel %vm1008_vm5, %v1065_v21, 0  ;;  %v2788_v23 = vpop.eup %2787 }
 0x373   : > { %1079 = vmatpush.bf16.msrb.mxu0 %v1070_v22  ;;  %v1003_v24 = vmul.f32 %v2788_v23, %v2786_v15  ;;  %v2790_v36 = vpop.eup %2789 }
 0x374   : > { %v1115_v38 = vsel %vm992_vm7, %v2790_v36, 0.0  ;;  %1287 = vmatpush.bf16.msrb.mxu1 %v2609_v18  ;;  %v2633_v18 = vld [vmem:[%s3582_s19 + $0x8c] sm:$0xf] }
 0x375   : > { %v1004_v25 = vpack.c.bf16 %v1003_v24, %v1003_v24 }
 0x377   : > { %2283 = vmatmul.msk.bf16.vlgmr.msrb.gmra.mxu3 %vm992_vm7, %v1004_v25 }
 0x378   : > { %1288 = vmatpush.bf16.msrb.mxu1 %v2608_v19  ;;  %v2398_v19 = vld [vmem:[%s3582_s19 + $0x98] sm:$0xf0] }
 0x383   : > { %v1145_v26 = vpop.permute.xlu1 %1144 }
 0x384   : > { %v1150_v27 = vsel %vm971_vm4, %v1145_v26, 0 }
 0x385   : > { %1159 = vmatpush.bf16.xpose.msrb.mxu3 %v1150_v27 }
 0x387   : > { %2284 = vmatmul.msk.bf16.vlgmr.msra.gmra.mxu3 %vm971_vm4, %v1027_v60 }
 0x397   : > { %2288 = vmatmul.msk.bf16.vlgmr.msrb.gmra.mxu3 %vm971_vm4, %v1143_v28  ;;  %v2777_v28 = vld [vmem:[%s3584_s20] ss:$0 sm:$0xff] }
 0x3fa   : > { %v3334_v29 = vpop.f32.mrf.mxu3 }
 0x402   : > { %v1023_v30 = vpop.f32.mrf.mxu3 }
 0x40a   : > { %v1046_v33 = vpop.f32.mrf.mxu3 }
 0x40b   : > { %v1050_v34 = vsel %vm966_vm6, %v1046_v33, -1e+30  ;;  %v2436_v33 = vld [vmem:[%s3582_s19 + $0xe0] sm:$0xf] }
 0x40c   : > { %v1051_v35 = vsel %vm992_vm7, %v1050_v34, -inf }
 0x40d   : > { %1052 = vmax.xlane.f32.xlu2 %v1051_v35  ;;  %v2644_v35 = vld [vmem:[%s3582_s19 + $0xe4] sm:$0xf] }
 0x412   : > { %v1048_v37 = vpop.f32.mrf.mxu3 }
 0x413   : > { %v2438_v37 = vld [vmem:[%s3582_s19 + $0xf0] sm:$0xf0] }
 0x415   : > { %1116 = vadd.xlane.f32.xlu2 %v1115_v38  ;;  %v2444_v38 = vld [vmem:[%s3582_s19 + $0xe8] sm:$0xf] }
 0x41a   : > { %v1161_v39 = vpop.f32.mrf.mxu3 }
 0x41b   : > { %v1165_v40 = vsel %vm966_vm6, %v1161_v39, -1e+30  ;;  %v2647_v39 = vld [vmem:[%s3582_s19 + $0xf4] sm:$0xf0] }
 0x41c   : > { %v1166_v41 = vsel %vm992_vm7, %v1165_v40, -inf }
 0x41d   : > { %1167 = vmax.xlane.f32.xlu1 %v1166_v41  ;;  %v2445_v41 = vor.u32 %v2647_v39, %v2444_v38  ;;  %v2358_v39 = vld [vmem:[%s3582_s19 + $0x50] sm:$0xf0] }
 0x422   : > { %v1163_v42 = vpop.f32.mrf.mxu3 }
 0x423   : > { %v2645_v42 = vld [vmem:[%s3582_s19 + $0xec] sm:$0xf] }
 0x480   : > { %v1053_v43 = vpop.xlane.xlu2 %1052 }
 0x481   : > { %v1054_v44 = vsub.f32 %v1050_v34, %v1053_v43  ;;  %v2646_v34 = vld [vmem:[%s3582_s19 + $0xec] sm:$0xf0] }
 0x483   : > { %v1055_v45 = vmul.f32 1.442695, %v1054_v44 }
 0x485   : > { %2791 = vpow2.f32 %v1055_v45 }
 0x488   : > { %v1117_v52 = vpop.xlane.xlu2 %1116 }
 0x48b   : > { %v2792_v46 = vpop.eup %2791 }
 0x48c   : > { %v1057_v20 = vsel %vm992_vm7, %v2792_v46, 0.0 }
 0x48d   : > { %1058 = vadd.xlane.f32.xlu2 %v1057_v20 }
 0x490   : > { %v1168_v47 = vpop.xlane.xlu1 %1167 }
 0x491   : > { %v1169_v48 = vsub.f32 %v1165_v40, %v1168_v47  ;;  %v2441_v40 = vor.u32 %v2644_v35, %v2438_v37  ;;  %v2420_v47 = vld [vmem:[%s3582_s19 + $0xc0] sm:$0xf]  ;;  %v2624_v37 = vld [vmem:[%s3582_s19 + $0x44] sm:$0xf] }
 0x492   : > { %v2356_v35 = vld [vmem:[%s3582_s19 + $0x40] sm:$0xf] }
 0x493   : > { %v1170_v49 = vmul.f32 1.442695, %v1169_v48  ;;  %1546 = vmatpush.bf16.msra.mxu3 %v2441_v40  ;;  %v2642_v48 = vld [vmem:[%s3582_s19 + $0xcc] sm:$0xf0]  ;;  %v2364_v40 = vld [vmem:[%s3582_s19 + $0x48] sm:$0xf] }
 0x495   : > { %2793 = vpow2.f32 %v1170_v49  ;;  %v2640_v49 = vld [vmem:[%s3582_s19 + $0xc4] sm:$0xf] }
 0x496   : > { %2795 = vrcp.f32 %v1117_v52  ;;  %v2428_v52 = vld [vmem:[%s3582_s19 + $0xc8] sm:$0xf] }
 0x49b   : > { %v2794_v50 = vpop.eup %2793 }
 0x49c   : > { %v1172_v51 = vsel %vm992_vm7, %v2794_v50, 0.0  ;;  %v2796_v55 = vpop.eup %2795 }
 0x49d   : > { %1173 = vadd.xlane.f32.xlu1 %v1172_v51  ;;  %v1119_v57 = vmul.f32 %v2796_v55, %v2790_v36  ;;  %v2437_v36 = vor.u32 %v2646_v34, %v2436_v33  ;;  %v2422_v51 = vld [vmem:[%s3582_s19 + $0xd0] sm:$0xf0]  ;;  %v2382_v33 = vld [vmem:[%s3582_s19 + $0x78] sm:$0xf0] }
 0x49e   : > { %v2425_v55 = vor.u32 %v2640_v49, %v2422_v51  ;;  %v2348_v51 = vld [vmem:[%s3582_s19 + $0x28] sm:$0xf] }
 0x49f   : > { %v1120_v62 = vpack.c.bf16 %v1119_v57, %v1119_v57  ;;  %v2641_v57 = vld [vmem:[%s3582_s19 + $0xcc] sm:$0xf] }
 0x4a0   : > { %1547 = vmatpush.bf16.msra.mxu3 %v2425_v55 }
 0x4a5   : > { %1121 = vrot.lane.b32.xlu2 %v3310_v54, %s2980_s23 }
 0x4b6   : > { %1178 = vrot.lane.b32.xlu1 %v3310_v54, %s2982_s3 }
 0x500   : > { %v1059_v53 = vpop.xlane.xlu2 %1058 }
 0x501   : > { %2797 = vrcp.f32 %v1059_v53  ;;  %v2643_v53 = vld [vmem:[%s3582_s19 + $0xd4] sm:$0xf0] }
 0x507   : > { %v2798_v56 = vpop.eup %2797 }
 0x508   : > { %v1061_v58 = vmul.f32 %v2798_v56, %v2792_v46  ;;  %v1122_v59 = vpop.permute.xlu2 %1121  ;;  %v2429_v56 = vor.u32 %v2643_v53, %v2428_v52  ;;  %v2623_v52 = vld [vmem:[%s3582_s19 + $0x34] sm:$0xf0] }
 0x509   : > { %v1127_v60 = vsel %vm1008_vm5, %v1122_v59, 0  ;;  %v2349_v55 = vor.u32 %v2623_v52, %v2348_v51  ;;  %v2649_v51 = vld [vmem:[%s3232_s25 + $0x8] sm:$0xff] }
 0x50a   : > { %1136 = vmatpush.bf16.msra.mxu2 %v1127_v60  ;;  %v1062_v61 = vpack.c.bf16 %v1061_v58, %v1061_v58  ;;  %v2430_v58 = vld [vmem:[%s3582_s19 + $0xd8] sm:$0xf0]  ;;  %v2404_v60 = vld [vmem:[%s3582_s19 + $0xa0] sm:$0xf]  ;;  %v2657_v52 = vld [vmem:[%s3232_s25 + $0x48] sm:$0xff] }
 0x50b   : > { %v2433_v59 = vor.u32 %v2641_v57, %v2430_v58  ;;  %v2350_v57 = vld [vmem:[%s3582_s19 + $0x38] sm:$0xf0]  ;;  %v2324_v58 = vld [vmem:[%s3582_s19] sm:$0xf] }
 0x50c   : > { %2285 = vmatmul.msk.bf16.vlgmr.msrb.gmra.mxu0 %vm992_vm7, %v1062_v61  ;;  %v2638_v61 = vld [vmem:[%s3582_s19 + $0xac] sm:$0xf0] }
 0x50d   : > { %2287 = vmatmul.msk.bf16.vlgmr.msra.gmra.mxu2 %vm992_vm7, %v1120_v62  ;;  %v2636_v62 = vld [vmem:[%s3582_s19 + $0xa4] sm:$0xf] }
 0x50e   : > { %1533 = vmatpush.bf16.msrb.mxu2 %v2437_v36  ;;  %v2626_v36 = vld [vmem:[%s3582_s19 + $0x4c] sm:$0xf0] }
 0x50f   : > { %v2357_v38 = vor.u32 %v2626_v36, %v2356_v35  ;;  %v2676_v35 = vld [vmem:[%s3232_s25 + $0xe0] sm:$0xff]  ;;  %v2653_v36 = vld [vmem:[%s3232_s25 + $0x28] sm:$0xff] }
 0x510   : > { %v1174_v54 = vpop.xlane.xlu1 %1173 }
 0x511   : > { %2799 = vrcp.f32 %v1174_v54  ;;  %v2405_v54 = vor.u32 %v2638_v61, %v2404_v60  ;;  %v2618_v60 = vld [vmem:[%s3582_s19 + $0xc] sm:$0xf0]  ;;  %v2616_v61 = vld [vmem:[%s3582_s19 + $0x4] sm:$0xf] }
 0x517   : > { %v2800_v63 = vpop.eup %2799 }
 0x518   : > { %v1176_v0 = vmul.f32 %v2800_v63, %v2794_v50  ;;  %v2421_v50 = vor.u32 %v2642_v48, %v2420_v47  ;;  %v2406_v63 = vld [vmem:[%s3582_s19 + $0xb0] sm:$0xf0]  ;;  %v2622_v47 = vld [vmem:[%s3582_s19 + $0x2c] sm:$0xf0]  ;;  %v2620_v48 = vld [vmem:[%s3582_s19 + $0x24] sm:$0xf] }
 0x51a   : > { %v1177_v4 = vpack.c.bf16 %v1176_v0, %v1176_v0  ;;  %1534 = vmatpush.bf16.msrb.mxu2 %v2421_v50  ;;  %v2412_v0 = vld [vmem:[%s3582_s19 + $0xa8] sm:$0xf]  ;;  %v2342_v50 = vld [vmem:[%s3582_s19 + $0x30] sm:$0xf0] }
 0x51b   : > { %v2345_v53 = vor.u32 %v2620_v48, %v2342_v50  ;;  %v2658_v48 = vld [vmem:[%s3232_s25 + $0x50] sm:$0xff]  ;;  %v2672_v50 = vld [vmem:[%s3232_s25 + $0xc0] sm:$0xff] }
 0x51e   : > { %1535 = vmatpush.bf16.msrb.mxu2 %v2405_v54  ;;  %v2325_v54 = vor.u32 %v2618_v60, %v2324_v58 }
 0x522   : > { %1536 = vmatpush.bf16.msrb.mxu2 %v2389_v11  ;;  %v2670_v11 = vld [vmem:[%s3232_s25 + $0xb0] sm:$0xff] }
 0x528   : > { %v1179_v2 = vpop.permute.xlu1 %1178 }
 0x529   : > { %v1184_v3 = vsel %vm1008_vm5, %v1179_v2, 0  ;;  %v2639_v2 = vld [vmem:[%s3582_s19 + $0xb4] sm:$0xf0] }
 0x52a   : > { %1193 = vmatpush.bf16.msra.mxu0 %v1184_v3  ;;  %v2409_v3 = vor.u32 %v2636_v62, %v2406_v63  ;;  %v2326_v62 = vld [vmem:[%s3582_s19 + $0x10] sm:$0xf0] }
 0x52b   : > { %v2329_v63 = vor.u32 %v2616_v61, %v2326_v62 }
 0x52c   : > { %1548 = vmatpush.bf16.msra.mxu3 %v2409_v3  ;;  %v2617_v3 = vld [vmem:[%s3582_s19 + $0xc] sm:$0xf] }
 0x52d   : > { %2289 = vmatmul.msk.bf16.vlgmr.msra.gmra.mxu0 %vm992_vm7, %v1177_v4  ;;  %v2413_v4 = vor.u32 %v2639_v2, %v2412_v0  ;;  %v2332_v0 = vld [vmem:[%s3582_s19 + $0x8] sm:$0xf]  ;;  %v2619_v2 = vld [vmem:[%s3582_s19 + $0x14] sm:$0xf0] }
 0x52e   : > { %1559 = vmatpush.bf16.msrb.mxu0 %v2445_v41  ;;  %v2627_v41 = vld [vmem:[%s3582_s19 + $0x54] sm:$0xf0] }
 0x532   : > { %1560 = vmatpush.bf16.msrb.mxu0 %v2429_v56  ;;  %v2621_v56 = vld [vmem:[%s3582_s19 + $0x2c] sm:$0xf] }
 0x536   : > { %1561 = vmatpush.bf16.msrb.mxu0 %v2413_v4  ;;  %v2333_v4 = vor.u32 %v2619_v2, %v2332_v0 }
 0x589   : > { %v1081_v5 = vpop.f32.mrf.mxu0 }
 0x58a   : > { %1200 = vrot.lane.b32.xlu0 %v1081_v5, %s2982_s3  ;;  %v2637_v5 = vld [vmem:[%s3582_s19 + $0xac] sm:$0xf] }
 0x590   : > { %v1138_v6 = vpop.f32.mrf.mxu2 }
 0x591   : > { %v1083_v7 = vpop.f32.mrf.mxu0 }
 0x592   : > { %1204 = vrot.lane.b32.xlu0 %v1138_v6, %s2980_s23  ;;  %v2414_v6 = vld [vmem:[%s3582_s19 + $0xb8] sm:$0xf0] }
 0x593   : > { %v2417_v7 = vor.u32 %v2637_v5, %v2414_v6  ;;  %v2334_v5 = vld [vmem:[%s3582_s19 + $0x18] sm:$0xf0] }
 0x594   : > { %v2337_v6 = vor.u32 %v2617_v3, %v2334_v5 }
 0x598   : > { %v1140_v10 = vpop.f32.mrf.mxu2 }
 0x599   : > { %v2632_v10 = vld [vmem:[%s3582_s19 + $0x84] sm:$0xf] }
 0x5aa   : > { %v1195_v14 = vpop.f32.mrf.mxu0 }
 0x5ab   : > { %1208 = vrot.lane.b32.xlu2 %v1195_v14, %s2981_s8  ;;  %v2635_v14 = vld [vmem:[%s3582_s19 + $0x94] sm:$0xf0] }
 0x5ac   : > { %v2397_v16 = vor.u32 %v2635_v14, %v2396_v13 }
 0x5ae   : > { %1562 = vmatpush.bf16.msrb.mxu0 %v2397_v16 }
 0x5b2   : > { %v1197_v15 = vpop.f32.mrf.mxu0 }
 0x5b3   : > { %v2393_v15 = vor.u32 %v2632_v10, %v2390_v12  ;;  %v2678_v12 = vld [vmem:[%s3232_s25 + $0xf0] sm:$0xff] }
 0x5b5   : > { %1549 = vmatpush.bf16.msra.mxu3 %v2393_v15 }
 0x5fc   : > { %v1201_v21 = vpop.permute.xlu0 %1200 }
 0x5fd   : > { %v1211_v22 = vsel %vm971_vm4, %v3334_v29, %v1201_v21  ;;  %v2401_v21 = vor.u32 %v2633_v18, %v2398_v19 }
 0x604   : > { %v1205_v23 = vpop.permute.xlu0 %1204 }
 0x605   : > { %v1213_v24 = vsel %vm1212_vm8, %v1211_v22, %v1205_v23  ;;  %v1209_v25 = vpop.permute.xlu2 %1208  ;;  %v2372_v22 = vld [vmem:[%s3582_s19 + $0x60] sm:$0xf]  ;;  %v2630_v23 = vld [vmem:[%s3582_s19 + $0x6c] sm:$0xf0] }
 0x606   : > { %v1215_v26 = vsel %vm1214_vm9, %v1213_v24, %v1209_v25  ;;  %v2628_v24 = vld [vmem:[%s3582_s19 + $0x64] sm:$0xf]  ;;  %v2373_v25 = vor.u32 %v2630_v23, %v2372_v22 }
 0x607   : > { %v1216_v27 = vpack.c.bf16 %v1215_v26, %v1215_v26  ;;  %v2374_v26 = vld [vmem:[%s3582_s19 + $0x70] sm:$0xf0] }
 0x608   : > { %1537 = vmatpush.bf16.msrb.mxu2 %v2373_v25 }
 0x609   : > { %1289 = vmatmul.bf16.vlgmr.msrb.gmra.mxu1 %v1216_v27  ;;  %v2380_v27 = vld [vmem:[%s3582_s19 + $0x68] sm:$0xf] }
 0x60c   : > { %1538 = vmatpush.bf16.msrb.mxu2 %v2357_v38  ;;  %v2667_v38 = vld [vmem:[%s3232_s25 + $0x98] sm:$0xff] }
 0x686   : > { %v1290_v30 = vpop.f32.mrf.mxu1 }
 0x687   : > { %v1294_v31 = vadd.f32 %v1290_v30, %v3235_v1  ;;  %v2446_v1 = vld [vmem:[%s3582_s19 + $0xf8] sm:$0xf0]  ;;  %v2377_v30 = vor.u32 %v2628_v24, %v2374_v26  ;;  %v2779_v24 = vld [vmem:[%s697_s15] ss:$0 sm:$0xff] }
 0x688   : > { %v2449_v43 = vor.u32 %v2645_v42, %v2446_v1  ;;  %v2361_v42 = vor.u32 %v2624_v37, %v2358_v39  ;;  %v2365_v1 = vor.u32 %v2627_v41, %v2364_v40  ;;  %v2661_v37 = vld [vmem:[%s3232_s25 + $0x68] sm:$0xff]  ;;  %v2675_v39 = vld [vmem:[%s3232_s25 + $0xd8] sm:$0xff]  ;;  %v2652_v40 = vld [vmem:[%s3232_s25 + $0x20] sm:$0xff] }
 0x689   : > { %v3371_v29 = vadd.f32 %v2777_v28, %v1294_v31  ;;  %v2631_v28 = vld [vmem:[%s3582_s19 + $0x74] sm:$0xf0]  ;;  %1550 = vmatpush.bf16.msra.mxu3 %v2377_v30  ;;  %v2663_v30 = vld [vmem:[%s3232_s25 + $0x78] sm:$0xff]  ;;  %v2660_v41 = vld [vmem:[%s3232_s25 + $0x60] sm:$0xff] }
 0x68a   : > { %1572 = vmatpush.bf16.msra.mxu1 %v2449_v43  ;;  %v2381_v31 = vor.u32 %v2631_v28, %v2380_v27  ;;  %v2625_v43 = vld [vmem:[%s3582_s19 + $0x4c] sm:$0xf]  ;;  %v2655_v28 = vld [vmem:[%s3232_s25 + $0x38] sm:$0xff] }
 0x68b   : > { %1302 = vadd.xlane.f32.xlu0 %v3371_v29 }
 0x68c   : > { %1563 = vmatpush.bf16.msrb.mxu0 %v2381_v31  ;;  %v2677_v31 = vld [vmem:[%s3232_s25 + $0xe8] sm:$0xff] }
 0x68d   : > { %1551 = vmatpush.bf16.msra.mxu3 %v2361_v42  ;;  %v2666_v42 = vld [vmem:[%s3232_s25 + $0x90] sm:$0xff] }
 0x68e   : > { %v1292_v32 = vpop.f32.mrf.mxu1  ;;  %1573 = vmatpush.bf16.msra.mxu1 %v2433_v59  ;;  %v2353_v59 = vor.u32 %v2621_v56, %v2350_v57  ;;  %v2656_v56 = vld [vmem:[%s3232_s25 + $0x40] sm:$0xff] }
 0x68f   : > { %v2629_v32 = vld [vmem:[%s3582_s19 + $0x6c] sm:$0xf] }
 0x690   : > { %v2385_v34 = vor.u32 %v2629_v32, %v2382_v33  ;;  %1564 = vmatpush.bf16.msrb.mxu0 %v2365_v1  ;;  %v2654_v32 = vld [vmem:[%s3232_s25 + $0x30] sm:$0xff] }
 0x691   : > { %1552 = vmatpush.bf16.msra.mxu3 %v2345_v53  ;;  %v2662_v33 = vld [vmem:[%s3232_s25 + $0x70] sm:$0xff]  ;;  %v1363_v53 = vld [vmem:[%s3225_s17] sm:$0xf] }
 0x692   : > { %1574 = vmatpush.bf16.msra.mxu1 %v2417_v7  ;;  %v2674_v1 = vld [vmem:[%s3232_s25 + $0xd0] sm:$0xff]  ;;  %v1367_v57 = vperm.slane %v1363_v53, 2  ;;  %v1368_v58 = vperm.slane %v1363_v53, 3 }
 0x694   : > { %1565 = vmatpush.bf16.msrb.mxu0 %v2349_v55  ;;  %v2648_v55 = vld [vmem:[%s3232_s25] sm:$0xff] }
 0x695   : > { %1553 = vmatpush.bf16.msra.mxu3 %v2329_v63  ;;  %v1366_v63 = vperm.slane %v1363_v53, 1 }
 0x696   : > { %1575 = vmatpush.bf16.msra.mxu1 %v2401_v21 }
 0x698   : > { %1566 = vmatpush.bf16.msrb.mxu0 %v2333_v4 }
 0x699   : > { %1894 = vmatpush.bf16.msrb.mxu3 %v2663_v30 }
 0x69a   : > { %1576 = vmatpush.bf16.msra.mxu1 %v2385_v34  ;;  %v2668_v34 = vld [vmem:[%s3232_s25 + $0xa0] sm:$0xff] }
 0x69c   : > { %1907 = vmatpush.bf16.msra.mxu0 %v2671_v8 }
 0x69d   : > { %1895 = vmatpush.bf16.msrb.mxu3 %v2662_v33 }
 0x6a0   : > { %1908 = vmatpush.bf16.msra.mxu0 %v2670_v11 }
 0x6a1   : > { %1896 = vmatpush.bf16.msrb.mxu3 %v2661_v37 }
 0x6a5   : > { %1897 = vmatpush.bf16.msrb.mxu3 %v2660_v41 }
 0x6fe   : > { %v1303_v44 = vpop.xlane.xlu0 %1302 }
 0x6ff   : > { %v1304_v45 = vmul.f32 %v1303_v44, %v3244_v17  ;;  %v2366_v44 = vld [vmem:[%s3582_s19 + $0x58] sm:$0xf0] }
 0x701   : > { %v3384_v46 = vsub.f32 %v3371_v29, %v1304_v45  ;;  %v2369_v45 = vor.u32 %v2625_v43, %v2366_v44  ;;  %v2651_v43 = vld [vmem:[%s3232_s25 + $0x18] sm:$0xff] }
 0x702   : > { %v2659_v44 = vld [vmem:[%s3232_s25 + $0x58] sm:$0xff] }
 0x703   : > { %v1306_v20 = vmul.f32 %v3384_v46, %v3384_v46  ;;  %1577 = vmatpush.bf16.msra.mxu1 %v2369_v45  ;;  %v2665_v45 = vld [vmem:[%s3232_s25 + $0x88] sm:$0xff]  ;;  %1898 = vmatpush.bf16.msrb.mxu3 %v2659_v44 }
 0x705   : > { %1307 = vadd.xlane.f32.xlu1 %v1306_v20  ;;  %v2340_v20 = vld [vmem:[%s3582_s19 + $0x20] sm:$0xf] }
 0x706   : > { %v2341_v49 = vor.u32 %v2622_v47, %v2340_v20  ;;  %v2673_v20 = vld [vmem:[%s3232_s25 + $0xc8] sm:$0xff]  ;;  %v2650_v47 = vld [vmem:[%s3232_s25 + $0x10] sm:$0xff] }
 0x707   : > { %1578 = vmatpush.bf16.msra.mxu1 %v2353_v59  ;;  %1899 = vmatpush.bf16.msrb.mxu3 %v2658_v48 }
 0x708   : > { %1539 = vmatpush.bf16.msrb.mxu2 %v2341_v49  ;;  %v2664_v49 = vld [vmem:[%s3232_s25 + $0x80] sm:$0xff] }
 0x70b   : > { %1579 = vmatpush.bf16.msra.mxu1 %v2337_v6  ;;  %1900 = vmatpush.bf16.msrb.mxu3 %v2657_v52 }
 0x70c   : > { %1540 = vmatpush.bf16.msrb.mxu2 %v2325_v54  ;;  %v1365_v54 = vperm.slane %v1363_v53, 0 }
 0x70f   : > { %1920 = vmatpush.bf16.msrb.mxu1 %v2679_v9  ;;  %1901 = vmatpush.bf16.msrb.mxu3 %v2656_v56 }
 0x710   : > { %1881 = vmatpush.bf16.msra.mxu2 %v2655_v28 }
 0x713   : > { %1921 = vmatpush.bf16.msrb.mxu1 %v2678_v12 }
 0x714   : > { %1882 = vmatpush.bf16.msra.mxu2 %v2654_v32 }
 0x717   : > { %1922 = vmatpush.bf16.msrb.mxu1 %v2677_v31 }
 0x718   : > { %1883 = vmatpush.bf16.msra.mxu2 %v2653_v36 }
 0x71b   : > { %1923 = vmatpush.bf16.msrb.mxu1 %v2676_v35 }
 0x71c   : > { %1884 = vmatpush.bf16.msra.mxu2 %v2652_v40 }
 0x71f   : > { %1924 = vmatpush.bf16.msrb.mxu1 %v2675_v39 }
 0x720   : > { %1885 = vmatpush.bf16.msra.mxu2 %v2651_v43 }
 0x723   : > { %1925 = vmatpush.bf16.msrb.mxu1 %v2674_v1 }
 0x724   : > { %1886 = vmatpush.bf16.msra.mxu2 %v2650_v47 }
 0x727   : > { %1926 = vmatpush.bf16.msrb.mxu1 %v2673_v20 }
 0x728   : > { %1887 = vmatpush.bf16.msra.mxu2 %v2649_v51 }
 0x72b   : > { %1927 = vmatpush.bf16.msrb.mxu1 %v2672_v50 }
 0x72c   : > { %1888 = vmatpush.bf16.msra.mxu2 %v2648_v55 }
 0x778   : > { %v1308_v7 = vpop.xlane.xlu1 %1307 }
 0x779   : > { %v1309_v10 = vmul.f32 %v1308_v7, %v3244_v17  ;;  %v2778_v17 = vld [vmem:[%s694_s18] ss:$0 sm:$0xff] }
 0x77b   : > { %v1310_v13 = vadd.f32 1e-05, %v1309_v10 }
 0x77d   : > { %2801 = vrsqrt.f32 %v1310_v13  ;;  %vm1317_vm11 = vweird.f32 %v1310_v13 }
 0x783   : > { %v2802_v14 = vpop.eup %2801 }
 0x784   : > { %v1312_v15 = vmul.f32 %v2802_v14, %v1310_v13  ;;  %vm1318_vm10 = vweird.f32 %v2802_v14 }
 0x785   : > { %vm1319_vm12 = vmor %vm1317_vm11, %vm1318_vm10 }
 0x786   : > { %v1313_v16 = vmul.f32 %v2802_v14, %v1312_v15 }
 0x788   : > { %v1314_v18 = vmul.f32 0.5, %v1313_v16 }
 0x78a   : > { %v1315_v19 = vsub.f32 1.5, %v1314_v18 }
 0x78c   : > { %v1316_v21 = vmul.f32 %v2802_v14, %v1315_v19 }
 0x78e   : > { %v1320_v22 = vsel %vm1319_vm12, %v2802_v14, %v1316_v21 }
 0x78f   : > { %v1321_v23 = vmul.f32 %v1320_v22, %v3384_v46  ;;  %v2669_v46 = vld [vmem:[%s3232_s25 + $0xa8] sm:$0xff] }
 0x790   : > { %1909 = vmatpush.bf16.msra.mxu0 %v2669_v46 }
 0x791   : > { %v1325_v25 = vmul.f32 %v2778_v17, %v1321_v23 }
 0x793   : > { %v1329_v26 = vadd.f32 %v2779_v24, %v1325_v25 }
 0x794   : > { %1910 = vmatpush.bf16.msra.mxu0 %v2668_v34 }
 0x795   : > { %v1330_v27 = vpack.c.bf16 %v1329_v26, %v1329_v26 }
 0x797   : > { %1541 = vmatmul.bf16.vlgmr.msrb.gmra.mxu2 %v1330_v27  ;;  %1554 = vmatmul.bf16.vlgmr.msra.gmra.mxu3 %v1330_v27 }
 0x798   : > { %1567 = vmatmul.bf16.vlgmr.msrb.gmra.mxu0 %v1330_v27  ;;  %1580 = vmatmul.bf16.vlgmr.msra.gmra.mxu1 %v1330_v27 }
 0x799   : > { %1911 = vmatpush.bf16.msra.mxu0 %v2667_v38 }
 0x79d   : > { %1912 = vmatpush.bf16.msra.mxu0 %v2666_v42 }
 0x7a1   : > { %1913 = vmatpush.bf16.msra.mxu0 %v2665_v45 }
 0x7a5   : > { %1914 = vmatpush.bf16.msra.mxu0 %v2664_v49 }
 0x815   : > { %v1568_v59 = vpop.f32.mrf.mxu0  ;;  %v1581_v60 = vpop.f32.mrf.mxu1 }
 0x816   : > { %v1569_v61 = vadd.f32 %v1568_v59, %v1367_v57  ;;  %v1582_v62 = vadd.f32 %v1581_v60, %v1368_v58  ;;  %v2780_v59 = vld [vmem:[%s704_s13] ss:$0 sm:$0xff] }
 0x818   : > { %v1591_v0 = vmul.f32 0.044715, %v1569_v61  ;;  %v1592_v2 = vmul.f32 0.044715, %v1582_v62  ;;  %v1587_v32 = vmul.f32 0.5, %v1569_v61  ;;  %v1588_v34 = vmul.f32 0.5, %v1582_v62 }
 0x81a   : > { %v1595_v3 = vmul.f32 %v1591_v0, %v1569_v61  ;;  %v1596_v4 = vmul.f32 %v1592_v2, %v1582_v62  ;;  %v1542_v5 = vpop.f32.mrf.mxu2  ;;  %v1555_v6 = vpop.f32.mrf.mxu3 }
 0x81b   : > { %v1543_v7 = vadd.f32 %v1542_v5, %v1365_v54  ;;  %v1556_v8 = vadd.f32 %v1555_v6, %v1366_v63 }
 0x81c   : > { %v1599_v9 = vmul.f32 %v1595_v3, %v1569_v61  ;;  %v1600_v10 = vmul.f32 %v1596_v4, %v1582_v62 }
 0x81d   : > { %v1589_v11 = vmul.f32 0.044715, %v1543_v7  ;;  %v1590_v12 = vmul.f32 0.044715, %v1556_v8  ;;  %v1570_v13 = vpop.f32.mrf.mxu0  ;;  %v1583_v14 = vpop.f32.mrf.mxu1  ;;  %v1585_v42 = vmul.f32 0.5, %v1543_v7  ;;  %v1586_v43 = vmul.f32 0.5, %v1556_v8 }
 0x81e   : > { %v1603_v15 = vadd.f32 %v1599_v9, %v1569_v61  ;;  %v1604_v16 = vadd.f32 %v1600_v10, %v1582_v62 }
 0x81f   : > { %v1593_v18 = vmul.f32 %v1589_v11, %v1543_v7  ;;  %v1594_v19 = vmul.f32 %v1590_v12, %v1556_v8 }
 0x820   : > { %v1607_v21 = vmul.f32 0.7978846, %v1603_v15  ;;  %v1608_v17 = vmul.f32 0.7978846, %v1604_v16 }
 0x821   : > { %v1597_v22 = vmul.f32 %v1593_v18, %v1543_v7  ;;  %v1598_v23 = vmul.f32 %v1594_v19, %v1556_v8 }
 0x822   : > { %v1544_v24 = vpop.f32.mrf.mxu2  ;;  %v1557_v25 = vpop.f32.mrf.mxu3  ;;  %2803 = vtanh.f32 %v1607_v21 }
 0x823   : > { %2805 = vtanh.f32 %v1608_v17  ;;  %v1601_v26 = vadd.f32 %v1597_v22, %v1543_v7  ;;  %v1602_v27 = vadd.f32 %v1598_v23, %v1556_v8 }
 0x825   : > { %v1605_v28 = vmul.f32 0.7978846, %v1601_v26  ;;  %v1606_v30 = vmul.f32 0.7978846, %v1602_v27 }
 0x827   : > { %2807 = vtanh.f32 %v1605_v28 }
 0x828   : > { %v2804_v46 = vpop.eup %2803  ;;  %2809 = vtanh.f32 %v1606_v30 }
 0x829   : > { %v2806_v31 = vpop.eup %2805  ;;  %v1615_v33 = vadd.f32 1.0, %v2804_v46 }
 0x82a   : > { %v1616_v35 = vadd.f32 1.0, %v2806_v31 }
 0x82b   : > { %v1619_v36 = vmul.f32 %v1615_v33, %v1587_v32 }
 0x82c   : > { %v1620_v37 = vmul.f32 %v1616_v35, %v1588_v34 }
 0x82d   : > { %v2808_v38 = vpop.eup %2807  ;;  %v1623_v39 = vpack.c.bf16 %v1619_v36, %v1619_v36 }
 0x82e   : > { %v2810_v40 = vpop.eup %2809  ;;  %v1624_v41 = vpack.c.bf16 %v1620_v37, %v1620_v37  ;;  %v1613_v1 = vadd.f32 1.0, %v2808_v38 }
 0x82f   : > { %1915 = vmatmul.bf16.vlgmr.msra.gmra.mxu0 %v1623_v39  ;;  %v1614_v44 = vadd.f32 1.0, %v2810_v40 }
 0x830   : > { %1928 = vmatmul.bf16.vlgmr.msrb.gmra.mxu1 %v1624_v41  ;;  %v1617_v45 = vmul.f32 %v1613_v1, %v1585_v42 }
 0x831   : > { %v1618_v20 = vmul.f32 %v1614_v44, %v1586_v43 }
 0x832   : > { %v1621_v47 = vpack.c.bf16 %v1617_v45, %v1617_v45 }
 0x833   : > { %v1622_v48 = vpack.c.bf16 %v1618_v20, %v1618_v20 }
 0x834   : > { %1889 = vmatmul.bf16.vlgmr.msra.gmra.mxu2 %v1621_v47 }
 0x835   : > { %1902 = vmatmul.bf16.vlgmr.msrb.gmra.mxu3 %v1622_v48 }
 0x8ac   : > { %v1916_v49 = vpop.f32.mrf.mxu0 }
 0x8ad   : > { %v1929_v50 = vpop.f32.mrf.mxu1 }
 0x8b4   : > { %v1918_v51 = vpop.f32.mrf.mxu0 }
 0x8b5   : > { %v1931_v52 = vpop.f32.mrf.mxu1 }
 0x8b7   : > { %v1890_v53 = vpop.f32.mrf.mxu2 }
 0x8b8   : > { %v1903_v55 = vpop.f32.mrf.mxu3 }
 0x8b9   : > { %v1904_v56 = vadd.f32 %v1903_v55, %v1890_v53 }
 0x8bb   : > { %v1917_v57 = vadd.f32 %v1916_v49, %v1904_v56 }
 0x8bd   : > { %v1930_v58 = vadd.f32 %v1929_v50, %v1917_v57 }
 0x8bf   : > { %v1933_v60 = vadd.f32 %v1930_v58, %v3371_v29  ;;  %v1892_v61 = vpop.f32.mrf.mxu2  ;;  %1943 = sbr.rel (%p2578_p3) target bundleno = 2245 (0x8c5), region = 92 }
 0x8c0   : > { %v1905_v62 = vpop.f32.mrf.mxu3 }
 0x8c1   : > { %v1938_v54 = vadd.f32 %v2780_v59, %v1933_v60 }
 0x8c3   : > { %1939 = vst [vmem:[#allocation2] sm:$0xff] %v1938_v54 }
 0x8c4   : > { %1944 = vst [vmem:[%s3230_s7] sm:$0xff] %v1938_v54 }
 0x8c5 PF: > { %s3588_s16 = sld [smem:[#allocation14_spill]] }
 0x8c6   : > { %s3589_s25 = sld [smem:[#allocation10_spill]] }
 0x8c7   : > { %s3590_s26 = sld [smem:[#allocation11_spill]] }
 0x8c8   : > { %s3591_s27 = sld [smem:[#allocation17_spill]] }
 0x8c9   : > { %s3592_s28 = sld [smem:[#allocation12_spill]] }
 0x8ca   : > { %s3593_s29 = sld [smem:[#allocation13_spill]] }
 0x8cb   : > { %s29_s15 = sadd.s32 1, %s3588_s16   ;;  %s3594_s30 = sld [smem:[#allocation15_spill]] }
 0x8cc   : > { %p26_p4 = scmp.ge.s32.totalorder %s29_s15, 6   ;;  %s3595_s14 = sld [smem:[#allocation16_spill]] }
 0x8ce   :  { %28 = sbr.rel (!%p26_p4) target bundleno = 20 (0x14), region = 174 }
 0x8d3   :  { %1964 = vsyncpa [#allocation4], 1 }
 0x8d4   :  { %1966 = vsyncpa [#allocation4 + $0x1], 1 }
 0x8d5   :  { %1967 = vsyncpa [#allocation6], 1 }
 0x8d6   :  { %1969 = vsyncpa [#allocation6 + $0x1], 1 }

</bundles_post_ra>
